<compile_context>
chip_gen: v7x
topology: tpu7x:2x2x1
jax: 0.10.0
libtpu: 0.0.40
codegen_flags: <defaults>
</compile_context>

<pallas_src>
import functools

import jax
import jax.numpy as jnp
from jax.experimental import pallas as pl
from jax.experimental.pallas import tpu as pltpu

BN_EPS = 1e-5


# ------------------------------ tiling helpers ------------------------------
def _batch_block(n, rows_per_image, bytes_per_image, vmem_budget=24 << 20):
    """Batch images folded per grid step: enough rows for the MXU, >=2 grid steps when
    possible (v7x megacore / pipeline overlap), and capped by a VMEM budget."""
    target = max(1, -(-128 // rows_per_image))          # aim for M = nb*Ho*Wo >= 128
    if n >= 2:
        target = max(1, min(target, n // 2))            # leave >= 2 grid steps
    cap = max(1, vmem_budget // max(1, bytes_per_image))
    nb = max(1, min(n, target, cap))
    while n % nb:
        nb -= 1
    return nb


def _row_tile(m):
    """Row tile (multiple of 8 sublanes, ~512-1024 preferred) for the elementwise kernel."""
    for t in (1024, 512, 256, 128, 64, 32, 16, 8):
        if m % t == 0:
            return t
    return m


# ------------- shared conv core: 9 accumulated shifted-window matmuls --------
def _conv3x3_accum(act, w_ref, acc_ref, *, nb, ho, wo, cin, cout, mxu_dtype):
    """3x3 'same' conv.  act: (nb, ho, wo, cin) f32 value.  w_ref: (9, cin, cout).
    acc_ref: (nb, ho, wo, cout) f32 VMEM scratch.  One full-M matmul per tap; the
    +/-1 spatial shift + border handling is a static sub-window accumulate, so the
    matmul operands are never copied and the lane axis is never sliced."""
    act_flat = act.reshape(nb * ho * wo, cin).astype(mxu_dtype)

    # Center tap (dy=dx=0) initializes the accumulator -> no zeroing pass.
    acc_ref[...] = jnp.dot(act_flat, w_ref[4],
                           preferred_element_type=jnp.float32).reshape(nb, ho, wo, cout)

    for dy in (-1, 0, 1):
        for dx in (-1, 0, 1):
            if dy == 0 and dx == 0:
                continue
            k = (dy + 1) * 3 + (dx + 1)
            p = jnp.dot(act_flat, w_ref[k],
                        preferred_element_type=jnp.float32).reshape(nb, ho, wo, cout)
            oy0, oy1 = max(0, -dy), ho - max(0, dy)     # output rows with in-bounds source
            ox0, ox1 = max(0, -dx), wo - max(0, dx)
            acc_ref[:, oy0:oy1, ox0:ox1, :] += p[:, oy0 + dy:oy1 + dy, ox0 + dx:ox1 + dx, :]


def _stats_and_store(acc_ref, o_ref, s_ref, sq_ref, *, cout):
    y = acc_ref[...]
    yf = y.reshape(-1, cout)
    s_ref[...] = jnp.sum(yf, axis=0).reshape(1, 1, cout)
    sq_ref[...] = jnp.sum(yf * yf, axis=0).reshape(1, 1, cout)
    o_ref[...] = y.astype(o_ref.dtype)


def _elu(y):
    # exp input clamped to <= 0 so the EUP never sees unbounded positives.
    return jnp.where(y > 0, y, jnp.exp(jnp.minimum(y, 0.0)) - 1.0)


# ---------------- kernel A: maxpool + conv1 + BN1 stats ----------------------
def _pool_conv_bnstats_kernel(x_ref, w_ref, o_ref, s_ref, sq_ref, acc_ref,
                              *, nb, ho, wo, cin, cout, mxu_dtype):
    # x_ref: (nb, ho, 2, wo, 2*cin) -- the 2x2 pool window exposed by a metadata reshape.
    x = x_ref[...]
    a = jnp.maximum(x[:, :, 0], x[:, :, 1])              # pool over the H offset (free)
    pooled = jnp.maximum(a[..., :cin], a[..., cin:])      # pool over the W offset
    _conv3x3_accum(pooled, w_ref, acc_ref, nb=nb, ho=ho, wo=wo, cin=cin, cout=cout,
                   mxu_dtype=mxu_dtype)
    _stats_and_store(acc_ref, o_ref, s_ref, sq_ref, cout=cout)


# ---------- kernel B: BN1-apply + ELU + conv2 + BN2 stats ---------------------
def _bnelu_conv_bnstats_kernel(x_ref, scale_ref, shift_ref, w_ref,
                               o_ref, s_ref, sq_ref, acc_ref,
                               *, nb, ho, wo, cin, cout, mxu_dtype):
    y = x_ref[...].astype(jnp.float32) * scale_ref[...] + shift_ref[...]
    act = _elu(y)                                         # elementwise stays f32 (v5e)
    _conv3x3_accum(act, w_ref, acc_ref, nb=nb, ho=ho, wo=wo, cin=cin, cout=cout,
                   mxu_dtype=mxu_dtype)
    _stats_and_store(acc_ref, o_ref, s_ref, sq_ref, cout=cout)


# ------------------- kernel C: BN2-apply + ELU (elementwise) ------------------
def _bn_elu_kernel(x_ref, scale_ref, shift_ref, o_ref):
    y = x_ref[...].astype(jnp.float32) * scale_ref[...] + shift_ref[...]
    o_ref[...] = _elu(y)


# ------------------------- host-side BN stat folding -------------------------
def _bn_fold(s_parts, sq_parts, count, gamma, beta):
    s = jnp.sum(s_parts, axis=(0, 1))
    sq = jnp.sum(sq_parts, axis=(0, 1))
    mean = s / count
    var = sq / count - mean * mean            # biased variance (PyTorch BN training fwd)
    scale = gamma / jnp.sqrt(var + BN_EPS)
    shift = beta - mean * scale               # conv bias cancels exactly under batch-stat BN
    c = gamma.shape[0]
    return (scale.reshape(1, c).astype(jnp.float32),
            shift.reshape(1, c).astype(jnp.float32))


# ------------------------------- Down module ---------------------------------
def init_down_params(key, in_ch, out_ch):
    ks = jax.random.split(key, 4)
    w1 = jax.random.normal(ks[0], (3, 3, in_ch, out_ch), jnp.float32) / jnp.sqrt(9.0 * in_ch)
    b1 = 0.01 * jax.random.normal(ks[1], (out_ch,), jnp.float32)
    w2 = jax.random.normal(ks[2], (3, 3, out_ch, out_ch), jnp.float32) / jnp.sqrt(9.0 * out_ch)
    b2 = 0.01 * jax.random.normal(ks[3], (out_ch,), jnp.float32)
    return dict(
        w1=w1, b1=b1, g1=jnp.ones((out_ch,), jnp.float32), be1=jnp.zeros((out_ch,), jnp.float32),
        w2=w2, b2=b2, g2=jnp.ones((out_ch,), jnp.float32), be2=jnp.zeros((out_ch,), jnp.float32),
    )


def down_forward(params, x_nchw, mxu_dtype=jnp.float32):
    # x_nchw: (N, Cin, H, W) like PyTorch; returns (N, Cout, H//2, W//2).
    x = jnp.transpose(x_nchw, (0, 2, 3, 1))            # NCHW -> NHWC (module-boundary glue)
    n, h, w, cin = x.shape
    ho, wo = h // 2, w // 2
    c1 = params["w1"].shape[-1]
    c2 = params["w2"].shape[-1]

    use_bf16 = jnp.dtype(mxu_dtype) == jnp.dtype(jnp.bfloat16)
    inter_dtype = jnp.bfloat16 if use_bf16 else jnp.float32   # y1/y2 HBM dtype (v7x item)
    it = jnp.dtype(inter_dtype).itemsize

    # Rough per-image VMEM footprint (double-buffered I/O blocks + f32 acc + live values).
    bytes_per_image = ho * wo * (
        2 * 4 * cin * 4                      # stage-1 pooled-window input block
        + 2 * c1 * it + 2 * c2 * it          # intermediate activation blocks
        + 4 * max(c1, c2)                    # f32 conv accumulator scratch
        + 4 * (cin + c1 + 2 * max(c1, c2)))  # live matmul operands / partials (rough)
    nb = _batch_block(n, ho * wo, bytes_per_image)
    g = n // nb
    cnt = n * ho * wo
    vmem_limit = int(min(60 << 20, max(32 << 20, 4 * nb * bytes_per_image)))

    xr = x.reshape(n, ho, 2, wo, 2 * cin)               # metadata-only split, no HBM copy
    w1 = params["w1"].reshape(9, cin, c1).astype(mxu_dtype)   # per-tap weights: no lane slicing
    w2 = params["w2"].reshape(9, c1, c2).astype(mxu_dtype)

    cparams = pltpu.CompilerParams(dimension_semantics=("parallel",),
                                   vmem_limit_bytes=vmem_limit)

    # --- stage 1: fused maxpool + conv1 + BN1-statistics ---
    y1, s1, sq1 = pl.pallas_call(
        functools.partial(_pool_conv_bnstats_kernel, nb=nb, ho=ho, wo=wo, cin=cin, cout=c1,
                          mxu_dtype=mxu_dtype),
        out_shape=(jax.ShapeDtypeStruct((n, ho, wo, c1), inter_dtype),
                   jax.ShapeDtypeStruct((g, 1, c1), jnp.float32),
                   jax.ShapeDtypeStruct((g, 1, c1), jnp.float32)),
        grid=(g,),
        in_specs=[pl.BlockSpec((nb, ho, 2, wo, 2 * cin), lambda i: (i, 0, 0, 0, 0)),
                  pl.BlockSpec((9, cin, c1), lambda i: (0, 0, 0))],
        out_specs=(pl.BlockSpec((nb, ho, wo, c1), lambda i: (i, 0, 0, 0)),
                   pl.BlockSpec((1, 1, c1), lambda i: (i, 0, 0)),
                   pl.BlockSpec((1, 1, c1), lambda i: (i, 0, 0))),
        scratch_shapes=[pltpu.VMEM((nb, ho, wo, c1), jnp.float32)],
        compiler_params=cparams,
    )(xr, w1)
    scale1, shift1 = _bn_fold(s1, sq1, cnt, params["g1"], params["be1"])

    # --- stage 2: fused BN1-apply + ELU + conv2 + BN2-statistics ---
    y2, s2, sq2 = pl.pallas_call(
        functools.partial(_bnelu_conv_bnstats_kernel, nb=nb, ho=ho, wo=wo, cin=c1, cout=c2,
                          mxu_dtype=mxu_dtype),
        out_shape=(jax.ShapeDtypeStruct((n, ho, wo, c2), inter_dtype),
                   jax.ShapeDtypeStruct((g, 1, c2), jnp.float32),
                   jax.ShapeDtypeStruct((g, 1, c2), jnp.float32)),
        grid=(g,),
        in_specs=[pl.BlockSpec((nb, ho, wo, c1), lambda i: (i, 0, 0, 0)),
                  pl.BlockSpec((1, c1), lambda i: (0, 0)),
                  pl.BlockSpec((1, c1), lambda i: (0, 0)),
                  pl.BlockSpec((9, c1, c2), lambda i: (0, 0, 0))],
        out_specs=(pl.BlockSpec((nb, ho, wo, c2), lambda i: (i, 0, 0, 0)),
                   pl.BlockSpec((1, 1, c2), lambda i: (i, 0, 0)),
                   pl.BlockSpec((1, 1, c2), lambda i: (i, 0, 0))),
        scratch_shapes=[pltpu.VMEM((nb, ho, wo, c2), jnp.float32)],
        compiler_params=cparams,
    )(y1, scale1, shift1, w2)
    scale2, shift2 = _bn_fold(s2, sq2, cnt, params["g2"], params["be2"])

    # --- stage 3: BN2-apply + ELU, lane-dense elementwise ---
    m2 = n * ho * wo
    if 128 % c2 == 0 and (m2 * c2) % 128 == 0:
        # Fold channels into 128-wide lanes (metadata-only reshape) -> unmasked vst.
        lanes = 128
        reps = lanes // c2
        rows = (m2 * c2) // lanes
        tm = _row_tile(rows)
        out = pl.pallas_call(
            _bn_elu_kernel,
            out_shape=jax.ShapeDtypeStruct((rows, lanes), jnp.float32),
            grid=(rows // tm,),
            in_specs=[pl.BlockSpec((tm, lanes), lambda i: (i, 0)),
                      pl.BlockSpec((1, lanes), lambda i: (0, 0)),
                      pl.BlockSpec((1, lanes), lambda i: (0, 0))],
            out_specs=pl.BlockSpec((tm, lanes), lambda i: (i, 0)),
            compiler_params=pltpu.CompilerParams(dimension_semantics=("parallel",)),
        )(y2.reshape(rows, lanes), jnp.tile(scale2, (1, reps)), jnp.tile(shift2, (1, reps)))
    else:
        tm = _row_tile(m2)
        out = pl.pallas_call(
            _bn_elu_kernel,
            out_shape=jax.ShapeDtypeStruct((m2, c2), jnp.float32),
            grid=(m2 // tm,),
            in_specs=[pl.BlockSpec((tm, c2), lambda i: (i, 0)),
                      pl.BlockSpec((1, c2), lambda i: (0, 0)),
                      pl.BlockSpec((1, c2), lambda i: (0, 0))],
            out_specs=pl.BlockSpec((tm, c2), lambda i: (i, 0)),
            compiler_params=pltpu.CompilerParams(dimension_semantics=("parallel",)),
        )(y2.reshape(m2, c2), scale2, shift2)

    out = out.reshape(n, ho, wo, c2)
    return jnp.transpose(out, (0, 3, 1, 2))            # back to NCHW


# ---------------------------- pure-JAX reference -----------------------------
def down_reference(params, x_nchw):
    x = jnp.transpose(x_nchw, (0, 2, 3, 1))
    n, h, w, c = x.shape
    x = x.reshape(n, h // 2, 2, w // 2, 2, c).max(axis=(2, 4))

    def conv(x, w, b):
        y = jax.lax.conv_general_dilated(
            x, w, window_strides=(1, 1), padding="SAME",
            dimension_numbers=("NHWC", "HWIO", "NHWC"))
        return y + b

    def bn_elu(x, g, be):
        mean = x.mean(axis=(0, 1, 2))
        var = x.var(axis=(0, 1, 2))                    # biased
        y = (x - mean) / jnp.sqrt(var + BN_EPS) * g + be
        return jnp.where(y > 0, y, jnp.exp(y) - 1.0)

    x = bn_elu(conv(x, params["w1"], params["b1"]), params["g1"], params["be1"])
    x = bn_elu(conv(x, params["w2"], params["b2"]), params["g2"], params["be2"])
    return jnp.transpose(x, (0, 3, 1, 2))


if __name__ == "__main__":
    key = jax.random.PRNGKey(0)
    kx, kp = jax.random.split(key)
    in_ch, out_ch = 4, 8
    x = jax.random.normal(kx, (2, in_ch, 16, 16), jnp.float32)   # NCHW, like PyTorch
    params = init_down_params(kp, in_ch, out_ch)

    ref = jax.block_until_ready(down_reference(params, x))

    # f32 MXU path: tight check against the f32 reference.
    out = jax.block_until_ready(down_forward(params, x))
    assert out.shape == (2, out_ch, 8, 8), out.shape
    err = float(jnp.max(jnp.abs(out - ref)))
    assert err < 2e-4, f"f32 max abs err {err}"

    # bf16-at-the-MXU path (v6e/v7x recommendation): loose sanity check only.
    out_bf16 = jax.block_until_ready(down_forward(params, x, mxu_dtype=jnp.bfloat16))
    err_bf = float(jnp.max(jnp.abs(out_bf16 - ref)))
    assert err_bf < 0.15, f"bf16 max abs err {err_bf}"

    print("KERNEL_OK")
</pallas_src>

<mosaic_0001>
module attributes {stable_mosaic.version = 11 : i64} {
  func.func @_pool_conv_bnstats_kernel(%arg0: i32, %arg1: memref<1x8x2x8x8xf32, #tpu.memory_space<vmem>>, %arg2: memref<9x4x8xf32, #tpu.memory_space<vmem>>, %arg3: memref<1x8x8x8xf32, #tpu.memory_space<vmem>>, %arg4: memref<1x1x8xf32, #tpu.memory_space<vmem>>, %arg5: memref<1x1x8xf32, #tpu.memory_space<vmem>>, %arg6: memref<1x8x8x8xf32, #tpu.memory_space<vmem>>) attributes {dimension_semantics = [#tpu.dimension_semantics<parallel>], iteration_bounds = array<i64: 2>, scalar_prefetch = 0 : i64, scratch_operands = 1 : i64, tpu.core_type = #tpu.core_type<tc>, window_params = [{transform_indices = @transform_0, window_bounds = array<i64: 1, 8, 2, 8, 8>}, {pipeline_mode = #tpu.pipeline_mode<synchronous>, transform_indices = @transform_1, window_bounds = array<i64: 9, 4, 8>}, {transform_indices = @transform_2, window_bounds = array<i64: 1, 8, 8, 8>}, {transform_indices = @transform_3, window_bounds = array<i64: 1, 1, 8>}, {transform_indices = @transform_4, window_bounds = array<i64: 1, 1, 8>}]} {
    %c0 = arith.constant 0 : index
    %c0_0 = arith.constant 0 : index
    %c0_1 = arith.constant 0 : index
    %c0_2 = arith.constant 0 : index
    %c0_3 = arith.constant 0 : index
    %0 = vector.load %arg1[%c0, %c0_0, %c0_1, %c0_2, %c0_3] : memref<1x8x2x8x8xf32, #tpu.memory_space<vmem>>, vector<1x8x2x8x8xf32>
    %1 = vector.extract_strided_slice %0 {offsets = [0, 0, 0, 0, 0], sizes = [1, 8, 1, 8, 8], strides = [1, 1, 1, 1, 1]} : vector<1x8x2x8x8xf32> to vector<1x8x1x8x8xf32>
    %2 = vector.shape_cast %1 : vector<1x8x1x8x8xf32> to vector<1x8x8x8xf32>
    %3 = vector.extract_strided_slice %0 {offsets = [0, 0, 1, 0, 0], sizes = [1, 8, 1, 8, 8], strides = [1, 1, 1, 1, 1]} : vector<1x8x2x8x8xf32> to vector<1x8x1x8x8xf32>
    %4 = vector.shape_cast %3 : vector<1x8x1x8x8xf32> to vector<1x8x8x8xf32>
    %5 = arith.maximumf %2, %4 : vector<1x8x8x8xf32>
    %6 = vector.extract_strided_slice %5 {offsets = [0, 0, 0, 0], sizes = [1, 8, 8, 4], strides = [1, 1, 1, 1]} : vector<1x8x8x8xf32> to vector<1x8x8x4xf32>
    %7 = vector.extract_strided_slice %5 {offsets = [0, 0, 0, 4], sizes = [1, 8, 8, 4], strides = [1, 1, 1, 1]} : vector<1x8x8x8xf32> to vector<1x8x8x4xf32>
    %8 = arith.maximumf %6, %7 : vector<1x8x8x4xf32>
    %9 = vector.shape_cast %8 : vector<1x8x8x4xf32> to vector<64x4xf32>
    %c4 = arith.constant 4 : index
    %c0_4 = arith.constant 0 : index
    %c0_5 = arith.constant 0 : index
    %10 = vector.load %arg2[%c4, %c0_4, %c0_5] : memref<9x4x8xf32, #tpu.memory_space<vmem>>, vector<1x4x8xf32>
    %11 = vector.shape_cast %10 : vector<1x4x8xf32> to vector<4x8xf32>
    %cst = arith.constant dense<0.000000e+00> : vector<64x8xf32>
    %12 = tpu.matmul %9, %11, %cst {dimension_numbers = #tpu.dot_dimension_numbers<[1], [0], [0], [1], [0, 0, 1, 1], [], []>} : vector<64x4xf32>, vector<4x8xf32>, vector<64x8xf32> -> vector<64x8xf32>
    %13 = vector.shape_cast %12 : vector<64x8xf32> to vector<1x8x8x8xf32>
    %c0_6 = arith.constant 0 : index
    %c0_7 = arith.constant 0 : index
    %c0_8 = arith.constant 0 : index
    %c0_9 = arith.constant 0 : index
    %14 = vector.load %arg6[%c0_6, %c0_7, %c0_8, %c0_9] : memref<1x8x8x8xf32, #tpu.memory_space<vmem>>, vector<1x8x8x8xf32>
    tpu.vector_store %arg6[%c0_6, %c0_7, %c0_8, %c0_9], %13 {strides = array<i32>} : memref<1x8x8x8xf32, #tpu.memory_space<vmem>>, vector<1x8x8x8xf32>,
    %c0_10 = arith.constant 0 : index
    %c0_11 = arith.constant 0 : index
    %c0_12 = arith.constant 0 : index
    %15 = vector.load %arg2[%c0_10, %c0_11, %c0_12] : memref<9x4x8xf32, #tpu.memory_space<vmem>>, vector<1x4x8xf32>
    %16 = vector.shape_cast %15 : vector<1x4x8xf32> to vector<4x8xf32>
    %cst_13 = arith.constant dense<0.000000e+00> : vector<64x8xf32>
    %17 = tpu.matmul %9, %16, %cst_13 {dimension_numbers = #tpu.dot_dimension_numbers<[1], [0], [0], [1], [0, 0, 1, 1], [], []>} : vector<64x4xf32>, vector<4x8xf32>, vector<64x8xf32> -> vector<64x8xf32>
    %18 = vector.shape_cast %17 : vector<64x8xf32> to vector<1x8x8x8xf32>
    %c0_14 = arith.constant 0 : index
    %c1 = arith.constant 1 : index
    %c1_15 = arith.constant 1 : index
    %c0_16 = arith.constant 0 : index
    %19 = vector.load %arg6[%c0_14, %c1, %c1_15, %c0_16] : memref<1x8x8x8xf32, #tpu.memory_space<vmem>>, vector<1x7x7x8xf32>
    %20 = vector.extract_strided_slice %18 {offsets = [0, 0, 0, 0], sizes = [1, 7, 7, 8], strides = [1, 1, 1, 1]} : vector<1x8x8x8xf32> to vector<1x7x7x8xf32>
    %21 = arith.addf %19, %20 : vector<1x7x7x8xf32>
    %c0_17 = arith.constant 0 : index
    %c1_18 = arith.constant 1 : index
    %c1_19 = arith.constant 1 : index
    %c0_20 = arith.constant 0 : index
    %22 = vector.load %arg6[%c0_17, %c1_18, %c1_19, %c0_20] : memref<1x8x8x8xf32, #tpu.memory_space<vmem>>, vector<1x7x7x8xf32>
    tpu.vector_store %arg6[%c0_17, %c1_18, %c1_19, %c0_20], %21 {strides = array<i32>} : memref<1x8x8x8xf32, #tpu.memory_space<vmem>>, vector<1x7x7x8xf32>,
    %c1_21 = arith.constant 1 : index
    %c0_22 = arith.constant 0 : index
    %c0_23 = arith.constant 0 : index
    %23 = vector.load %arg2[%c1_21, %c0_22, %c0_23] : memref<9x4x8xf32, #tpu.memory_space<vmem>>, vector<1x4x8xf32>
    %24 = vector.shape_cast %23 : vector<1x4x8xf32> to vector<4x8xf32>
    %cst_24 = arith.constant dense<0.000000e+00> : vector<64x8xf32>
    %25 = tpu.matmul %9, %24, %cst_24 {dimension_numbers = #tpu.dot_dimension_numbers<[1], [0], [0], [1], [0, 0, 1, 1], [], []>} : vector<64x4xf32>, vector<4x8xf32>, vector<64x8xf32> -> vector<64x8xf32>
    %26 = vector.shape_cast %25 : vector<64x8xf32> to vector<1x8x8x8xf32>
    %c0_25 = arith.constant 0 : index
    %c1_26 = arith.constant 1 : index
    %c0_27 = arith.constant 0 : index
    %c0_28 = arith.constant 0 : index
    %27 = vector.load %arg6[%c0_25, %c1_26, %c0_27, %c0_28] : memref<1x8x8x8xf32, #tpu.memory_space<vmem>>, vector<1x7x8x8xf32>
    %28 = vector.extract_strided_slice %26 {offsets = [0, 0, 0, 0], sizes = [1, 7, 8, 8], strides = [1, 1, 1, 1]} : vector<1x8x8x8xf32> to vector<1x7x8x8xf32>
    %29 = arith.addf %27, %28 : vector<1x7x8x8xf32>
    %c0_29 = arith.constant 0 : index
    %c1_30 = arith.constant 1 : index
    %c0_31 = arith.constant 0 : index
    %c0_32 = arith.constant 0 : index
    %30 = vector.load %arg6[%c0_29, %c1_30, %c0_31, %c0_32] : memref<1x8x8x8xf32, #tpu.memory_space<vmem>>, vector<1x7x8x8xf32>
    tpu.vector_store %arg6[%c0_29, %c1_30, %c0_31, %c0_32], %29 {strides = array<i32>} : memref<1x8x8x8xf32, #tpu.memory_space<vmem>>, vector<1x7x8x8xf32>,
    %c2 = arith.constant 2 : index
    %c0_33 = arith.constant 0 : index
    %c0_34 = arith.constant 0 : index
    %31 = vector.load %arg2[%c2, %c0_33, %c0_34] : memref<9x4x8xf32, #tpu.memory_space<vmem>>, vector<1x4x8xf32>
    %32 = vector.shape_cast %31 : vector<1x4x8xf32> to vector<4x8xf32>
    %cst_35 = arith.constant dense<0.000000e+00> : vector<64x8xf32>
    %33 = tpu.matmul %9, %32, %cst_35 {dimension_numbers = #tpu.dot_dimension_numbers<[1], [0], [0], [1], [0, 0, 1, 1], [], []>} : vector<64x4xf32>, vector<4x8xf32>, vector<64x8xf32> -> vector<64x8xf32>
    %34 = vector.shape_cast %33 : vector<64x8xf32> to vector<1x8x8x8xf32>
    %c0_36 = arith.constant 0 : index
    %c1_37 = arith.constant 1 : index
    %c0_38 = arith.constant 0 : index
    %c0_39 = arith.constant 0 : index
    %35 = vector.load %arg6[%c0_36, %c1_37, %c0_38, %c0_39] : memref<1x8x8x8xf32, #tpu.memory_space<vmem>>, vector<1x7x7x8xf32>
    %36 = vector.extract_strided_slice %34 {offsets = [0, 0, 1, 0], sizes = [1, 7, 7, 8], strides = [1, 1, 1, 1]} : vector<1x8x8x8xf32> to vector<1x7x7x8xf32>
    %37 = arith.addf %35, %36 : vector<1x7x7x8xf32>
    %c0_40 = arith.constant 0 : index
    %c1_41 = arith.constant 1 : index
    %c0_42 = arith.constant 0 : index
    %c0_43 = arith.constant 0 : index
    %38 = vector.load %arg6[%c0_40, %c1_41, %c0_42, %c0_43] : memref<1x8x8x8xf32, #tpu.memory_space<vmem>>, vector<1x7x7x8xf32>
    tpu.vector_store %arg6[%c0_40, %c1_41, %c0_42, %c0_43], %37 {strides = array<i32>} : memref<1x8x8x8xf32, #tpu.memory_space<vmem>>, vector<1x7x7x8xf32>,
    %c3 = arith.constant 3 : index
    %c0_44 = arith.constant 0 : index
    %c0_45 = arith.constant 0 : index
    %39 = vector.load %arg2[%c3, %c0_44, %c0_45] : memref<9x4x8xf32, #tpu.memory_space<vmem>>, vector<1x4x8xf32>
    %40 = vector.shape_cast %39 : vector<1x4x8xf32> to vector<4x8xf32>
    %cst_46 = arith.constant dense<0.000000e+00> : vector<64x8xf32>
    %41 = tpu.matmul %9, %40, %cst_46 {dimension_numbers = #tpu.dot_dimension_numbers<[1], [0], [0], [1], [0, 0, 1, 1], [], []>} : vector<64x4xf32>, vector<4x8xf32>, vector<64x8xf32> -> vector<64x8xf32>
    %42 = vector.shape_cast %41 : vector<64x8xf32> to vector<1x8x8x8xf32>
    %c0_47 = arith.constant 0 : index
    %c0_48 = arith.constant 0 : index
    %c1_49 = arith.constant 1 : index
    %c0_50 = arith.constant 0 : index
    %43 = vector.load %arg6[%c0_47, %c0_48, %c1_49, %c0_50] : memref<1x8x8x8xf32, #tpu.memory_space<vmem>>, vector<1x8x7x8xf32>
    %44 = vector.extract_strided_slice %42 {offsets = [0, 0, 0, 0], sizes = [1, 8, 7, 8], strides = [1, 1, 1, 1]} : vector<1x8x8x8xf32> to vector<1x8x7x8xf32>
    %45 = arith.addf %43, %44 : vector<1x8x7x8xf32>
    %c0_51 = arith.constant 0 : index
    %c0_52 = arith.constant 0 : index
    %c1_53 = arith.constant 1 : index
    %c0_54 = arith.constant 0 : index
    %46 = vector.load %arg6[%c0_51, %c0_52, %c1_53, %c0_54] : memref<1x8x8x8xf32, #tpu.memory_space<vmem>>, vector<1x8x7x8xf32>
    tpu.vector_store %arg6[%c0_51, %c0_52, %c1_53, %c0_54], %45 {strides = array<i32>} : memref<1x8x8x8xf32, #tpu.memory_space<vmem>>, vector<1x8x7x8xf32>,
    %c5 = arith.constant 5 : index
    %c0_55 = arith.constant 0 : index
    %c0_56 = arith.constant 0 : index
    %47 = vector.load %arg2[%c5, %c0_55, %c0_56] : memref<9x4x8xf32, #tpu.memory_space<vmem>>, vector<1x4x8xf32>
    %48 = vector.shape_cast %47 : vector<1x4x8xf32> to vector<4x8xf32>
    %cst_57 = arith.constant dense<0.000000e+00> : vector<64x8xf32>
    %49 = tpu.matmul %9, %48, %cst_57 {dimension_numbers = #tpu.dot_dimension_numbers<[1], [0], [0], [1], [0, 0, 1, 1], [], []>} : vector<64x4xf32>, vector<4x8xf32>, vector<64x8xf32> -> vector<64x8xf32>
    %50 = vector.shape_cast %49 : vector<64x8xf32> to vector<1x8x8x8xf32>
    %c0_58 = arith.constant 0 : index
    %c0_59 = arith.constant 0 : index
    %c0_60 = arith.constant 0 : index
    %c0_61 = arith.constant 0 : index
    %51 = vector.load %arg6[%c0_58, %c0_59, %c0_60, %c0_61] : memref<1x8x8x8xf32, #tpu.memory_space<vmem>>, vector<1x8x7x8xf32>
    %52 = vector.extract_strided_slice %50 {offsets = [0, 0, 1, 0], sizes = [1, 8, 7, 8], strides = [1, 1, 1, 1]} : vector<1x8x8x8xf32> to vector<1x8x7x8xf32>
    %53 = arith.addf %51, %52 : vector<1x8x7x8xf32>
    %c0_62 = arith.constant 0 : index
    %c0_63 = arith.constant 0 : index
    %c0_64 = arith.constant 0 : index
    %c0_65 = arith.constant 0 : index
    %54 = vector.load %arg6[%c0_62, %c0_63, %c0_64, %c0_65] : memref<1x8x8x8xf32, #tpu.memory_space<vmem>>, vector<1x8x7x8xf32>
    tpu.vector_store %arg6[%c0_62, %c0_63, %c0_64, %c0_65], %53 {strides = array<i32>} : memref<1x8x8x8xf32, #tpu.memory_space<vmem>>, vector<1x8x7x8xf32>,
    %c6 = arith.constant 6 : index
    %c0_66 = arith.constant 0 : index
    %c0_67 = arith.constant 0 : index
    %55 = vector.load %arg2[%c6, %c0_66, %c0_67] : memref<9x4x8xf32, #tpu.memory_space<vmem>>, vector<1x4x8xf32>
    %56 = vector.shape_cast %55 : vector<1x4x8xf32> to vector<4x8xf32>
    %cst_68 = arith.constant dense<0.000000e+00> : vector<64x8xf32>
    %57 = tpu.matmul %9, %56, %cst_68 {dimension_numbers = #tpu.dot_dimension_numbers<[1], [0], [0], [1], [0, 0, 1, 1], [], []>} : vector<64x4xf32>, vector<4x8xf32>, vector<64x8xf32> -> vector<64x8xf32>
    %58 = vector.shape_cast %57 : vector<64x8xf32> to vector<1x8x8x8xf32>
    %c0_69 = arith.constant 0 : index
    %c0_70 = arith.constant 0 : index
    %c1_71 = arith.constant 1 : index
    %c0_72 = arith.constant 0 : index
    %59 = vector.load %arg6[%c0_69, %c0_70, %c1_71, %c0_72] : memref<1x8x8x8xf32, #tpu.memory_space<vmem>>, vector<1x7x7x8xf32>
    %60 = vector.extract_strided_slice %58 {offsets = [0, 1, 0, 0], sizes = [1, 7, 7, 8], strides = [1, 1, 1, 1]} : vector<1x8x8x8xf32> to vector<1x7x7x8xf32>
    %61 = arith.addf %59, %60 : vector<1x7x7x8xf32>
    %c0_73 = arith.constant 0 : index
    %c0_74 = arith.constant 0 : index
    %c1_75 = arith.constant 1 : index
    %c0_76 = arith.constant 0 : index
    %62 = vector.load %arg6[%c0_73, %c0_74, %c1_75, %c0_76] : memref<1x8x8x8xf32, #tpu.memory_space<vmem>>, vector<1x7x7x8xf32>
    tpu.vector_store %arg6[%c0_73, %c0_74, %c1_75, %c0_76], %61 {strides = array<i32>} : memref<1x8x8x8xf32, #tpu.memory_space<vmem>>, vector<1x7x7x8xf32>,
    %c7 = arith.constant 7 : index
    %c0_77 = arith.constant 0 : index
    %c0_78 = arith.constant 0 : index
    %63 = vector.load %arg2[%c7, %c0_77, %c0_78] : memref<9x4x8xf32, #tpu.memory_space<vmem>>, vector<1x4x8xf32>
    %64 = vector.shape_cast %63 : vector<1x4x8xf32> to vector<4x8xf32>
    %cst_79 = arith.constant dense<0.000000e+00> : vector<64x8xf32>
    %65 = tpu.matmul %9, %64, %cst_79 {dimension_numbers = #tpu.dot_dimension_numbers<[1], [0], [0], [1], [0, 0, 1, 1], [], []>} : vector<64x4xf32>, vector<4x8xf32>, vector<64x8xf32> -> vector<64x8xf32>
    %66 = vector.shape_cast %65 : vector<64x8xf32> to vector<1x8x8x8xf32>
    %c0_80 = arith.constant 0 : index
    %c0_81 = arith.constant 0 : index
    %c0_82 = arith.constant 0 : index
    %c0_83 = arith.constant 0 : index
    %67 = vector.load %arg6[%c0_80, %c0_81, %c0_82, %c0_83] : memref<1x8x8x8xf32, #tpu.memory_space<vmem>>, vector<1x7x8x8xf32>
    %68 = vector.extract_strided_slice %66 {offsets = [0, 1, 0, 0], sizes = [1, 7, 8, 8], strides = [1, 1, 1, 1]} : vector<1x8x8x8xf32> to vector<1x7x8x8xf32>
    %69 = arith.addf %67, %68 : vector<1x7x8x8xf32>
    %c0_84 = arith.constant 0 : index
    %c0_85 = arith.constant 0 : index
    %c0_86 = arith.constant 0 : index
    %c0_87 = arith.constant 0 : index
    %70 = vector.load %arg6[%c0_84, %c0_85, %c0_86, %c0_87] : memref<1x8x8x8xf32, #tpu.memory_space<vmem>>, vector<1x7x8x8xf32>
    tpu.vector_store %arg6[%c0_84, %c0_85, %c0_86, %c0_87], %69 {strides = array<i32>} : memref<1x8x8x8xf32, #tpu.memory_space<vmem>>, vector<1x7x8x8xf32>,
    %c8 = arith.constant 8 : index
    %c0_88 = arith.constant 0 : index
    %c0_89 = arith.constant 0 : index
    %71 = vector.load %arg2[%c8, %c0_88, %c0_89] : memref<9x4x8xf32, #tpu.memory_space<vmem>>, vector<1x4x8xf32>
    %72 = vector.shape_cast %71 : vector<1x4x8xf32> to vector<4x8xf32>
    %cst_90 = arith.constant dense<0.000000e+00> : vector<64x8xf32>
    %73 = tpu.matmul %9, %72, %cst_90 {dimension_numbers = #tpu.dot_dimension_numbers<[1], [0], [0], [1], [0, 0, 1, 1], [], []>} : vector<64x4xf32>, vector<4x8xf32>, vector<64x8xf32> -> vector<64x8xf32>
    %74 = vector.shape_cast %73 : vector<64x8xf32> to vector<1x8x8x8xf32>
    %c0_91 = arith.constant 0 : index
    %c0_92 = arith.constant 0 : index
    %c0_93 = arith.constant 0 : index
    %c0_94 = arith.constant 0 : index
    %75 = vector.load %arg6[%c0_91, %c0_92, %c0_93, %c0_94] : memref<1x8x8x8xf32, #tpu.memory_space<vmem>>, vector<1x7x7x8xf32>
    %76 = vector.extract_strided_slice %74 {offsets = [0, 1, 1, 0], sizes = [1, 7, 7, 8], strides = [1, 1, 1, 1]} : vector<1x8x8x8xf32> to vector<1x7x7x8xf32>
    %77 = arith.addf %75, %76 : vector<1x7x7x8xf32>
    %c0_95 = arith.constant 0 : index
    %c0_96 = arith.constant 0 : index
    %c0_97 = arith.constant 0 : index
    %c0_98 = arith.constant 0 : index
    %78 = vector.load %arg6[%c0_95, %c0_96, %c0_97, %c0_98] : memref<1x8x8x8xf32, #tpu.memory_space<vmem>>, vector<1x7x7x8xf32>
    tpu.vector_store %arg6[%c0_95, %c0_96, %c0_97, %c0_98], %77 {strides = array<i32>} : memref<1x8x8x8xf32, #tpu.memory_space<vmem>>, vector<1x7x7x8xf32>,
    %c0_99 = arith.constant 0 : index
    %c0_100 = arith.constant 0 : index
    %c0_101 = arith.constant 0 : index
    %c0_102 = arith.constant 0 : index
    %79 = vector.load %arg6[%c0_99, %c0_100, %c0_101, %c0_102] : memref<1x8x8x8xf32, #tpu.memory_space<vmem>>, vector<1x8x8x8xf32>
    %80 = vector.shape_cast %79 : vector<1x8x8x8xf32> to vector<64x8xf32>
    %cst_103 = arith.constant dense<0.000000e+00> : vector<8xf32>
    %81 = vector.multi_reduction <add>, %80, %cst_103 [0] : vector<64x8xf32> to vector<8xf32>
    %82 = vector.shape_cast %81 : vector<8xf32> to vector<1x1x8xf32>
    %c0_104 = arith.constant 0 : index
    %c0_105 = arith.constant 0 : index
    %c0_106 = arith.constant 0 : index
    %83 = vector.load %arg4[%c0_104, %c0_105, %c0_106] : memref<1x1x8xf32, #tpu.memory_space<vmem>>, vector<1x1x8xf32>
    tpu.vector_store %arg4[%c0_104, %c0_105, %c0_106], %82 {strides = array<i32>} : memref<1x1x8xf32, #tpu.memory_space<vmem>>, vector<1x1x8xf32>,
    %84 = arith.mulf %80, %80 : vector<64x8xf32>
    %cst_107 = arith.constant dense<0.000000e+00> : vector<8xf32>
    %85 = vector.multi_reduction <add>, %84, %cst_107 [0] : vector<64x8xf32> to vector<8xf32>
    %86 = vector.shape_cast %85 : vector<8xf32> to vector<1x1x8xf32>
    %c0_108 = arith.constant 0 : index
    %c0_109 = arith.constant 0 : index
    %c0_110 = arith.constant 0 : index
    %87 = vector.load %arg5[%c0_108, %c0_109, %c0_110] : memref<1x1x8xf32, #tpu.memory_space<vmem>>, vector<1x1x8xf32>
    tpu.vector_store %arg5[%c0_108, %c0_109, %c0_110], %86 {strides = array<i32>} : memref<1x1x8xf32, #tpu.memory_space<vmem>>, vector<1x1x8xf32>,
    %c0_111 = arith.constant 0 : index
    %c0_112 = arith.constant 0 : index
    %c0_113 = arith.constant 0 : index
    %c0_114 = arith.constant 0 : index
    %88 = vector.load %arg3[%c0_111, %c0_112, %c0_113, %c0_114] : memref<1x8x8x8xf32, #tpu.memory_space<vmem>>, vector<1x8x8x8xf32>
    tpu.vector_store %arg3[%c0_111, %c0_112, %c0_113, %c0_114], %79 {strides = array<i32>} : memref<1x8x8x8xf32, #tpu.memory_space<vmem>>, vector<1x8x8x8xf32>,
    return
  }
  func.func @transform_0(%arg0: i32) -> (i32, i32, i32, i32, i32) {
    %c0_i32 = arith.constant 0 : i32
    %c0_i32_0 = arith.constant 0 : i32
    %c0_i32_1 = arith.constant 0 : i32
    %c0_i32_2 = arith.constant 0 : i32
    %c0_i32_3 = arith.constant 0 : i32
    return %arg0, %c0_i32, %c0_i32_0, %c0_i32_1, %c0_i32_2 : i32, i32, i32, i32, i32
  }
  func.func @transform_1(%arg0: i32) -> (i32, i32, i32) {
    %c0_i32 = arith.constant 0 : i32
    %c0_i32_0 = arith.constant 0 : i32
    %c0_i32_1 = arith.constant 0 : i32
    %c0_i32_2 = arith.constant 0 : i32
    return %c0_i32, %c0_i32_0, %c0_i32_1 : i32, i32, i32
  }
  func.func @transform_2(%arg0: i32) -> (i32, i32, i32, i32) {
    %c0_i32 = arith.constant 0 : i32
    %c0_i32_0 = arith.constant 0 : i32
    %c0_i32_1 = arith.constant 0 : i32
    %c0_i32_2 = arith.constant 0 : i32
    return %arg0, %c0_i32, %c0_i32_0, %c0_i32_1 : i32, i32, i32, i32
  }
  func.func @transform_3(%arg0: i32) -> (i32, i32, i32) {
    %c0_i32 = arith.constant 0 : i32
    %c0_i32_0 = arith.constant 0 : i32
    %c0_i32_1 = arith.constant 0 : i32
    return %arg0, %c0_i32, %c0_i32_0 : i32, i32, i32
  }
  func.func @transform_4(%arg0: i32) -> (i32, i32, i32) {
    %c0_i32 = arith.constant 0 : i32
    %c0_i32_0 = arith.constant 0 : i32
    %c0_i32_1 = arith.constant 0 : i32
    return %arg0, %c0_i32, %c0_i32_0 : i32, i32, i32
  }
}

</mosaic_0001>

<bundles_post_ra>
// kernel: tpu_custom_call.1
= control target key start
LH: loop header
LB: loop body
LE: loop exit
PB: predicated region body
PF: predicated region fallthrough
CT: control target
= control target key end

     0   :  { %10 = vsyncpa [#allocation4], 0  ;;  %s2993_s0 = inlined_call_operand.hbm [shape: f32[2,8,2,8,8], index: 0, kind: input, shape index: {}]   ;;  %s2994_s1 = inlined_call_operand.vmem [shape: f32[9,4,8], index: 1, kind: input, shape index: {}]   ;;  %s2995_s2 = inlined_call_operand.hbm [shape: f32[2,8,8,8], index: 2, kind: output, shape index: {0}]   ;;  %s2996_s3 = inlined_call_operand.hbm [shape: f32[2,1,8], index: 3, kind: output, shape index: {1}]   ;;  %s2997_s4 = inlined_call_operand.hbm [shape: f32[2,1,8], index: 4, kind: output, shape index: {2}]  }
   0x1   :  { %12 = vsyncpa [#allocation4 + $0x1], 0 }
   0x2   :  { %13 = vsyncpa [#allocation5], 0 }
   0x3   :  { %15 = vsyncpa [#allocation5 + $0x1], 0 }
   0x4   :  { %16 = vsyncpa [#allocation8], 0 }
   0x5   :  { %18 = vsyncpa [#allocation8 + $0x1], 0  ;;  %s2368_s15 = smov 0   ;;  %s2370_s16 = smov 0  }
   0x6   :  { %s2372_s17 = smov 0   ;;  %s2374_s18 = smov 0  }
   0x7 LB: > { %s2389_s19 = sadd.s32 4294967295, %s2332_s18   ;;  %s1799_s20 = sadd.s32 4294967294, %s2332_s18   ;;  %s2332_s18 = sphi %s2374_s18, %s3010_s18   ;;  %s2328_s17 = sphi %s2372_s17, %s3009_s17   ;;  %s2324_s16 = sphi %s2370_s16, %s3008_s16   ;;  %s2320_s15 = sphi %s2368_s15, %s3007_s15  }
   0x8   : > { %s2393_s21 = sadd.s32 1, %s2332_s18   ;;  %s31_s22 = sadd.s32 1, %s2328_s17 }
   0x9   : > { %s28_s23 = ssub.s32 %s2332_s18, %s2393_s21  ;;  %p38_p0 = scmp.ne.s32.totalorder %s2328_s17, %s2324_s16 }
   0xa   : > { %p29_p1 = scmp.eq.s32.totalorder %s28_s23, 0  ;;  %p39_p2 = scmp.eq.s32.totalorder %s2332_s18, 0 }
   0xb   : > { %p44_p3 = scmp.ne.s32.totalorder %s2324_s16, %s2320_s15  ;;  %p45_p4 = scmp.eq.s32.totalorder %s2389_s19, 0 }
   0xc   : > { %s2405_s24 = scalar_select %p29_p1, %s2328_s17, %s31_s22  }
   0xd   : > { %p2407_p5 = por %p39_p2, %p38_p0  ;;  %p2411_p6 = por %p45_p4, %p44_p3 }
   0xe   : > { %p89_p7 = scmp.eq.s32.totalorder %s2389_s19, 1  ;;  %p95_p8 = scmp.eq.s32.totalorder %s1799_s20, 1 }
   0xf   : > { %p2137_p10 = scmp.lt.s32.totalorder %s2332_s18, 2  ;;  %s170_s29 = sand.u32 1, %s2328_s17  }
  0x10   : > { %p2420_p11 = por %p89_p7, %p38_p0  ;;  %p2424_p12 = por %p95_p8, %p44_p3 }
  0x11   : > { %s1904_s30 = sshll.u32 %s2332_s18, 11  ;;  %s1802_s5 = sshll.u32 %s170_s29, 7 }
  0x12   : > { %s3001_s27 = scalar_select %p2420_p11, 1, 0 }
  0x13   : > { %s3002_s28 = scalar_select %p2424_p12, 1, 0 }
  0x14   : > { %s2433_s8 = scalar_lea.hbm %s2993_s0, %s1904_s30  ;;  %s174_s9 = scalar_lea.vmem [#allocation3], %s1802_s5 }
  0x15   : > { %s181_s10 = sshll.u32 %s174_s9, 4  ;;  %p2437_p13 = pnand %p2137_p10, %p2407_p5  ;;  %s2441_s10 = int_to_ptr.vmem [resolvable:$true] %s181_s10 }
  0x16   : > { %s2443_s12 = scalar_lea.sflag [#allocation4], %s170_s29  ;;  %s2176_s13 = scalar_lea.hbm %s2433_s8, 2048 }
  0x17   : > { %p2177_p0 = scmp.ne.s32.totalorder %s2433_s8, %s2176_s13  ;;  %p2178_p1 = pneg %p2437_p13 }
  0x18   : > { %s2181_s23 = scalar_lea.hbm %s2993_s0, 4096  ;;  %p2182_p4 = scmp.lt.u32.totalorder %s2433_s8, %s2993_s0 }
  0x19   : > { %p2179_p2 = pnand %p2178_p1, %p2177_p0  ;;  %p2183_p5 = scmp.lt.u32.totalorder %s2181_s23, %s2176_s13 }
  0x1a   : > { %p2185_p8 = scmp.lt.u32.totalorder %s2176_s13, %s2433_s8 }
  0x1b   : > { %p2180_p3 = pneg %p2179_p2  ;;  %p2184_p7 = por %p2183_p5, %p2182_p4 }
  0x1d   : > { %p2186_p10 = por %p2185_p8, %p2184_p7 }
  0x1f   : > { %p2187_p9 = pnand %p2186_p10, %p2180_p3 }
  0x21   : > { %2190 = shalt.err (!%p2187_p9)
}
  0x22   : > { %s2191_s29 = scalar_lea.vmem %s2441_s10, 2048  ;;  %s2334_s5 = smov [#allocation3]  }
  0x23   : > { %p2192_p0 = scmp.ne.s32.totalorder %s2441_s10, %s2191_s29  ;;  %s2196_s6 = sshll.u32 %s2334_s5, 4  ;;  %s2197_s6 = int_to_ptr.vmem [resolvable:$false] %s2196_s6 }
  0x24   : > { %s2198_s7 = scalar_lea.vmem %s2197_s6, 4096  ;;  %p2199_p11 = scmp.lt.s32.totalorder %s2441_s10, %s2197_s6 }
  0x25   : > { %p2194_p2 = pnand %p2192_p0, %p2178_p1  ;;  %p2200_p4 = scmp.lt.s32.totalorder %s2198_s7, %s2191_s29 }
  0x27   : > { %p2195_p12 = pneg %p2194_p2  ;;  %p2201_p5 = por %p2200_p4, %p2199_p11 }
  0x29   : > { %p2202_p7 = pnand %p2201_p5, %p2195_p12 }
  0x2b   : > { %2205 = shalt.err (!%p2202_p7)
}
  0x2c   : > { %s2335_s9 = smov 128   ;;  %s2336_s13 = smov 8  }
  0x2d   : > { %2126 = dma.hbm_to_vmem [thread:$0]  (!%p2437_p13), %s2433_s8, 2048, %s2441_s10, %s2443_s12, %s2335_s9, %s2335_s9, %s2336_s13  }
  0x2e   : > { %p1805_p9 = scmp.ge.s32.totalorder %s2332_s18, 1  ;;  %p189_p1 = scmp.lt.s32.totalorder %s2332_s18, 3 }
  0x30   : > { %p190_p3 = pnand %p1805_p9, %p189_p1 }
  0x31   : > { %s2474_s14 = sand.u32 (!%p190_p3), 1, %s2324_s16  }
  0x32   : > { %193 = sbr.rel (%p190_p3) target bundleno = 565 (0x235), region = 28  ;;  %s1806_s22 = sshll.u32 (!%p190_p3), %s2474_s14, 7 }
  0x33   : > { %s196_s23 = scalar_lea.sflag (!%p190_p3), [#allocation4], %s2474_s14  ;;  %s2478_s25 = scalar_lea.vmem (!%p190_p3), [#allocation3], %s1806_s22 }
  0x39   : > { %2307 = dma.done.wait (%p2411_p6), %s196_s23, 2048  }
  0x3a   : > { %2309 = vsyncadd (%p2411_p6), %s196_s23, 4294965248  ;;  %v240_v0 = vld [vmem:[%s2478_s25 + $0x40] sm:$0xff]  ;;  %v241_v1 = vld [vmem:[%s2478_s25 + $0x48] sm:$0xff]  ;;  %s2337_s26 = smov 124   ;;  %vm323_vm0 = vcmask 1043456   ;;  %vm298_vm1 = vcmask 31744  }
  0x3b   : > { %v232_v2 = vld [vmem:[%s2478_s25] sm:$0xff]  ;;  %v252_v3 = vmax.f32 %v240_v0, %v241_v1  ;;  %v233_v4 = vld [vmem:[%s2478_s25 + $0x8] sm:$0xff]  ;;  %v242_v5 = vld [vmem:[%s2478_s25 + $0x50] sm:$0xff]  ;;  %vm432_vm2 = vcmask 64512   ;;  %vm564_vm3 = vcmask 63488   ;;  %s1807_s12 = sshll.u32 %s2474_s14, 6 }
  0x3c   : > { %v243_v6 = vld [vmem:[%s2478_s25 + $0x58] sm:$0xff]  ;;  %v248_v7 = vmax.f32 %v232_v2, %v233_v4  ;;  %v234_v8 = vld [vmem:[%s2478_s25 + $0x10] sm:$0xff]  ;;  %v236_v14 = vld [vmem:[%s2478_s25 + $0x20] sm:$0xff]  ;;  %s2817_s30 = scalar_lea.vmem [#allocation6], %s1807_s12  ;;  %s1905_s29 = sshll.u32 %s2389_s19, 10 }
  0x3d   : > { %v235_v9 = vld [vmem:[%s2478_s25 + $0x18] sm:$0xff]  ;;  %272 = vrot.lane.b32.xlu1 %v252_v3, %s2337_s26  ;;  %v253_v10 = vmax.f32 %v242_v5, %v243_v6  ;;  %v238_v12 = vld [vmem:[%s2478_s25 + $0x30] sm:$0xff]  ;;  %v237_v15 = vld [vmem:[%s2478_s25 + $0x28] sm:$0xff]  ;;  %s1647_s5 = sshll.u32 %s2817_s30, 4  ;;  %s2859_s9 = scalar_lea.hbm %s2995_s2, %s1905_s29  ;;  %s2861_s5 = int_to_ptr.vmem [resolvable:$true] %s1647_s5 }
  0x3e   : > { %264 = vrot.lane.b32.xlu0 %v248_v7, %s2337_s26  ;;  %v249_v11 = vmax.f32 %v234_v8, %v235_v9  ;;  %v239_v13 = vld [vmem:[%s2478_s25 + $0x38] sm:$0xff]  ;;  %v1808_v16 = vld [vmem:[%s2994_s1 + $0x10] sm:$0xf]  ;;  %v441_v17 = vld [vmem:[%s2994_s1] sm:$0xf]  ;;  %v250_v20 = vmax.f32 %v236_v14, %v237_v15  ;;  %s1626_s13 = scalar_lea.sflag [#allocation5], %s2474_s14 }
  0x3f   : > { %1987 = vmatprep.subr.msk.mxu0 %vm323_vm0, %v1808_v16  ;;  %2113 = vmatprep.subr.msk.mxu1 %vm323_vm0, %v1808_v16  ;;  %v1827_v18 = vld [vmem:[%s2994_s1 + $0x4] sm:$0xf]  ;;  %v251_v19 = vmax.f32 %v238_v12, %v239_v13  ;;  %v246_v21 = vld [vmem:[%s2478_s25 + $0x70] sm:$0xff]  ;;  %v247_v22 = vld [vmem:[%s2478_s25 + $0x78] sm:$0xff]  ;;  %s2206_s22 = scalar_lea.vmem %s2861_s5, 1024  ;;  %p3004_p11 = scmp.ne.s32.totalorder %s3001_s27, 0 }
  0x40   : > { %1988 = vmatpush3.msk.msra.mxu0 %vm323_vm0, %v1808_v16  ;;  %2114 = vmatpush3.msk.msra.mxu1 %vm323_vm0, %v1808_v16  ;;  %v244_v23 = vld [vmem:[%s2478_s25 + $0x60] sm:$0xff]  ;;  %v245_v24 = vld [vmem:[%s2478_s25 + $0x68] sm:$0xff]  ;;  %v255_v25 = vmax.f32 %v246_v21, %v247_v22  ;;  %v1867_v45 = vld [vmem:[%s2994_s1 + $0x18] sm:$0xf]  ;;  %p2207_p6 = scmp.ne.s32.totalorder %s2861_s5, %s2206_s22  ;;  %s2338_s23 = smov [#allocation6]  }
  0x41   : > { %274 = vrot.lane.b32.xlu1 %v253_v10, %s2337_s26  ;;  %2001 = vmatprep.subr.msk.mxu1 %vm323_vm0, %v441_v17  ;;  %v254_v26 = vmax.f32 %v244_v23, %v245_v24  ;;  %v1837_v35 = vld [vmem:[%s2994_s1 + $0x8] sm:$0xf]  ;;  %v1847_v36 = vld [vmem:[%s2994_s1 + $0xc] sm:$0xf]  ;;  %v1857_v46 = vld [vmem:[%s2994_s1 + $0x14] sm:$0xf] }
  0x42   : > { %266 = vrot.lane.b32.xlu0 %v249_v11, %s2337_s26  ;;  %2015 = vmatprep.subr.msk.mxu0 %vm323_vm0, %v1827_v18  ;;  %v1887_v47 = vld [vmem:[%s2994_s1 + $0x20] sm:$0xf]  ;;  %v1877_v48 = vld [vmem:[%s2994_s1 + $0x1c] sm:$0xf]  ;;  %p2208_p12 = pnand %p2207_p6, %p3004_p11  ;;  %s2210_s25 = sshll.u32 %s2338_s23, 4  ;;  %s2211_s25 = int_to_ptr.vmem [resolvable:$false] %s2210_s25 }
  0x43   : > { %p2213_p8 = scmp.lt.s32.totalorder %s2861_s5, %s2211_s25 }
  0x44   : > { %p2209_p13 = pneg %p2208_p12 }
  0x45   : > { %270 = vrot.lane.b32.xlu1 %v251_v19, %s2337_s26 }
  0x46   : > { %268 = vrot.lane.b32.xlu0 %v250_v20, %s2337_s26 }
  0x49   : > { %278 = vrot.lane.b32.xlu1 %v255_v25, %s2337_s26 }
  0x4a   : > { %276 = vrot.lane.b32.xlu0 %v254_v26, %s2337_s26  ;;  %s2212_s26 = scalar_lea.vmem %s2211_s25, 2048 }
  0x4b   : > { %p2214_p10 = scmp.lt.s32.totalorder %s2212_s26, %s2206_s22 }
  0x4d   : > { %p2215_p0 = por %p2214_p10, %p2213_p8 }
  0x4f   : > { %p2216_p2 = pnand %p2215_p0, %p2209_p13 }
  0xaf   : > { %v273_v27 = vpop.permute.xlu1 %272 }
  0xb0   : > { %v2523_v28 = vmax.f32 %v252_v3, %v273_v27  ;;  %v265_v29 = vpop.permute.xlu0 %264 }
  0xb1   : > { %v2525_v30 = vmax.f32 %v248_v7, %v265_v29 }
  0xb2   : > { %1995 = vmatprep.mubr.msk.f32.mxu1 %vm298_vm1, %v2523_v28 }
  0xb3   : > { %1989 = vmatprep.mubr.msk.f32.mxu0 %vm298_vm1, %v2525_v30  ;;  %v275_v31 = vpop.permute.xlu1 %274 }
  0xb4   : > { %v2531_v32 = vmax.f32 %v253_v10, %v275_v31  ;;  %v267_v33 = vpop.permute.xlu0 %266 }
  0xb5   : > { %v2533_v34 = vmax.f32 %v249_v11, %v267_v33 }
  0xb6   : > { %1996 = vmatmul.mubr.msk.f32.vlgmr.msra.gmra.mrb[0].mxu1 %vm298_vm1, %v2531_v32 }
  0xb7   : > { %1990 = vmatmul.mubr.msk.f32.vlgmr.msra.gmra.mrb[0].mxu0 %vm298_vm1, %v2533_v34  ;;  %v271_v37 = vpop.permute.xlu1 %270  ;;  %2002 = vmatpush3.msk.msra.mxu1 %vm323_vm0, %v441_v17 }
  0xb8   : > { %v269_v38 = vpop.permute.xlu0 %268  ;;  %v2546_v39 = vmax.f32 %v251_v19, %v271_v37  ;;  %2016 = vmatpush3.msk.msra.mxu0 %vm323_vm0, %v1827_v18  ;;  %2029 = vmatprep.subr.msk.mxu1 %vm323_vm0, %v1837_v35 }
  0xb9   : > { %v2550_v40 = vmax.f32 %v250_v20, %v269_v38  ;;  %2043 = vmatprep.subr.msk.mxu0 %vm323_vm0, %v1847_v36 }
  0xbb   : > { %1992 = vmatprep.mubr.msk.f32.mxu0 %vm298_vm1, %v2550_v40  ;;  %v279_v41 = vpop.permute.xlu1 %278 }
  0xbc   : > { %1993 = vmatmul.mubr.msk.f32.gmra.mrb[2].mxu0 %vm298_vm1, %v2546_v39  ;;  %v277_v42 = vpop.permute.xlu0 %276  ;;  %v2557_v43 = vmax.f32 %v255_v25, %v279_v41 }
  0xbd   : > { %v2559_v44 = vmax.f32 %v254_v26, %v277_v42  ;;  %2017 = vmatprep.mubr.msk.f32.mxu0 %vm298_vm1, %v2525_v30 }
  0xbf   : > { %1998 = vmatprep.mubr.msk.f32.mxu1 %vm298_vm1, %v2559_v44 }
  0xc0   : > { %1999 = vmatmul.mubr.msk.f32.gmra.mrb[2].mxu1 %vm298_vm1, %v2557_v43  ;;  %2018 = vmatmul.mubr.msk.f32.vlgmr.msra.gmra.mrb[4].mxu0 %vm298_vm1, %v2533_v34 }
  0xc1   : > { %2003 = vmatprep.mubr.msk.f32.mxu1 %vm298_vm1, %v2525_v30  ;;  %2020 = vmatprep.mubr.msk.f32.mxu0 %vm298_vm1, %v2550_v40 }
  0xc2   : > { %2044 = vmatpush3.msk.msra.mxu0 %vm323_vm0, %v1847_v36 }
  0xc3   : > { %2071 = vmatprep.subr.msk.mxu0 %vm323_vm0, %v1867_v45 }
  0xc4   : > { %2004 = vmatmul.mubr.msk.f32.vlgmr.msra.gmra.mrb[4].mxu1 %vm298_vm1, %v2533_v34  ;;  %2021 = vmatmul.mubr.msk.f32.gmra.mrb[6].mxu0 %vm298_vm1, %v2546_v39 }
  0xc5   : > { %2006 = vmatprep.mubr.msk.f32.mxu1 %vm298_vm1, %v2550_v40  ;;  %2023 = vmatprep.mubr.msk.f32.mxu0 %vm298_vm1, %v2523_v28 }
  0xc6   : > { %2030 = vmatpush3.msk.msra.mxu1 %vm323_vm0, %v1837_v35 }
  0xc7   : > { %2057 = vmatprep.subr.msk.mxu1 %vm323_vm0, %v1857_v46 }
  0xc8   : > { %2007 = vmatmul.mubr.msk.f32.gmra.mrb[6].mxu1 %vm298_vm1, %v2546_v39  ;;  %2024 = vmatmul.mubr.msk.f32.gmra.mrb[8].mxu0 %vm298_vm1, %v2531_v32 }
  0xc9   : > { %2009 = vmatprep.mubr.msk.f32.mxu1 %vm298_vm1, %v2523_v28  ;;  %2026 = vmatprep.mubr.msk.f32.mxu0 %vm298_vm1, %v2559_v44 }
  0xcc   : > { %2010 = vmatmul.mubr.msk.f32.gmra.mrb[8].mxu1 %vm298_vm1, %v2531_v32  ;;  %2027 = vmatmul.mubr.msk.f32.gmra.mrb[10].mxu0 %vm298_vm1, %v2557_v43 }
  0xcd   : > { %2012 = vmatprep.mubr.msk.f32.mxu1 %vm298_vm1, %v2559_v44  ;;  %2045 = vmatprep.mubr.msk.f32.mxu0 %vm298_vm1, %v2525_v30 }
  0xd0   : > { %2013 = vmatmul.mubr.msk.f32.gmra.mrb[10].mxu1 %vm298_vm1, %v2557_v43  ;;  %2046 = vmatmul.mubr.msk.f32.vlgmr.msra.gmra.mrb[12].mxu0 %vm298_vm1, %v2533_v34 }
  0xd1   : > { %2031 = vmatprep.mubr.msk.f32.mxu1 %vm298_vm1, %v2525_v30  ;;  %2048 = vmatprep.mubr.msk.f32.mxu0 %vm298_vm1, %v2550_v40 }
  0xd2   : > { %2072 = vmatpush3.msk.msra.mxu0 %vm323_vm0, %v1867_v45 }
  0xd3   : > { %2099 = vmatprep.subr.msk.mxu0 %vm323_vm0, %v1887_v47 }
  0xd4   : > { %2032 = vmatmul.mubr.msk.f32.vlgmr.msra.gmra.mrb[12].mxu1 %vm298_vm1, %v2533_v34  ;;  %2049 = vmatmul.mubr.msk.f32.gmra.mrb[14].mxu0 %vm298_vm1, %v2546_v39 }
  0xd5   : > { %2034 = vmatprep.mubr.msk.f32.mxu1 %vm298_vm1, %v2550_v40  ;;  %2051 = vmatprep.mubr.msk.f32.mxu0 %vm298_vm1, %v2523_v28 }
  0xd6   : > { %2058 = vmatpush3.msk.msra.mxu1 %vm323_vm0, %v1857_v46 }
  0xd7   : > { %2085 = vmatprep.subr.msk.mxu1 %vm323_vm0, %v1877_v48 }
  0xd8   : > { %2035 = vmatmul.mubr.msk.f32.gmra.mrb[14].mxu1 %vm298_vm1, %v2546_v39  ;;  %2052 = vmatmul.mubr.msk.f32.gmra.mrb[16].mxu0 %vm298_vm1, %v2531_v32 }
  0xd9   : > { %2037 = vmatprep.mubr.msk.f32.mxu1 %vm298_vm1, %v2523_v28  ;;  %2054 = vmatprep.mubr.msk.f32.mxu0 %vm298_vm1, %v2559_v44 }
  0xdc   : > { %2038 = vmatmul.mubr.msk.f32.gmra.mrb[16].mxu1 %vm298_vm1, %v2531_v32  ;;  %2055 = vmatmul.mubr.msk.f32.gmra.mrb[18].mxu0 %vm298_vm1, %v2557_v43 }
  0xdd   : > { %2040 = vmatprep.mubr.msk.f32.mxu1 %vm298_vm1, %v2559_v44  ;;  %2073 = vmatprep.mubr.msk.f32.mxu0 %vm298_vm1, %v2525_v30 }
  0xe0   : > { %2041 = vmatmul.mubr.msk.f32.gmra.mrb[18].mxu1 %vm298_vm1, %v2557_v43  ;;  %2074 = vmatmul.mubr.msk.f32.vlgmr.msra.gmra.mrb[20].mxu0 %vm298_vm1, %v2533_v34 }
  0xe1   : > { %2059 = vmatprep.mubr.msk.f32.mxu1 %vm298_vm1, %v2525_v30  ;;  %2076 = vmatprep.mubr.msk.f32.mxu0 %vm298_vm1, %v2550_v40 }
  0xe2   : > { %2100 = vmatpush3.msk.msra.mxu0 %vm323_vm0, %v1887_v47 }
  0xe4   : > { %2060 = vmatmul.mubr.msk.f32.vlgmr.msra.gmra.mrb[20].mxu1 %vm298_vm1, %v2533_v34  ;;  %2077 = vmatmul.mubr.msk.f32.gmra.mrb[22].mxu0 %vm298_vm1, %v2546_v39 }
  0xe5   : > { %2062 = vmatprep.mubr.msk.f32.mxu1 %vm298_vm1, %v2550_v40  ;;  %2079 = vmatprep.mubr.msk.f32.mxu0 %vm298_vm1, %v2523_v28 }
  0xe6   : > { %2086 = vmatpush3.msk.msra.mxu1 %vm323_vm0, %v1877_v48 }
  0xe8   : > { %2063 = vmatmul.mubr.msk.f32.gmra.mrb[22].mxu1 %vm298_vm1, %v2546_v39  ;;  %2080 = vmatmul.mubr.msk.f32.gmra.mrb[24].mxu0 %vm298_vm1, %v2531_v32 }
  0xe9   : > { %2065 = vmatprep.mubr.msk.f32.mxu1 %vm298_vm1, %v2523_v28  ;;  %2082 = vmatprep.mubr.msk.f32.mxu0 %vm298_vm1, %v2559_v44 }
  0xec   : > { %2066 = vmatmul.mubr.msk.f32.gmra.mrb[24].mxu1 %vm298_vm1, %v2531_v32  ;;  %2083 = vmatmul.mubr.msk.f32.gmra.mrb[26].mxu0 %vm298_vm1, %v2557_v43 }
  0xed   : > { %2068 = vmatprep.mubr.msk.f32.mxu1 %vm298_vm1, %v2559_v44  ;;  %2101 = vmatprep.mubr.msk.f32.mxu0 %vm298_vm1, %v2525_v30 }
  0xf0   : > { %2069 = vmatmul.mubr.msk.f32.gmra.mrb[26].mxu1 %vm298_vm1, %v2557_v43  ;;  %2102 = vmatmul.mubr.msk.f32.vlgmr.msra.gmra.mrb[28].mxu0 %vm298_vm1, %v2533_v34 }
  0xf1   : > { %2087 = vmatprep.mubr.msk.f32.mxu1 %vm298_vm1, %v2525_v30  ;;  %2104 = vmatprep.mubr.msk.f32.mxu0 %vm298_vm1, %v2550_v40 }
  0xf4   : > { %2088 = vmatmul.mubr.msk.f32.vlgmr.msra.gmra.mrb[28].mxu1 %vm298_vm1, %v2533_v34  ;;  %2105 = vmatmul.mubr.msk.f32.gmra.mrb[30].mxu0 %vm298_vm1, %v2546_v39 }
  0xf5   : > { %2090 = vmatprep.mubr.msk.f32.mxu1 %vm298_vm1, %v2550_v40  ;;  %2107 = vmatprep.mubr.msk.f32.mxu0 %vm298_vm1, %v2523_v28 }
  0xf8   : > { %2091 = vmatmul.mubr.msk.f32.gmra.mrb[30].mxu1 %vm298_vm1, %v2546_v39  ;;  %2108 = vmatmul.mubr.msk.f32.gmra.mrb[32].mxu0 %vm298_vm1, %v2531_v32 }
  0xf9   : > { %2093 = vmatprep.mubr.msk.f32.mxu1 %vm298_vm1, %v2523_v28  ;;  %2110 = vmatprep.mubr.msk.f32.mxu0 %vm298_vm1, %v2559_v44 }
  0xfc   : > { %2094 = vmatmul.mubr.msk.f32.gmra.mrb[32].mxu1 %vm298_vm1, %v2531_v32  ;;  %2111 = vmatmul.mubr.msk.f32.gmra.mrb[34].mxu0 %vm298_vm1, %v2557_v43 }
  0xfd   : > { %2096 = vmatprep.mubr.msk.f32.mxu1 %vm298_vm1, %v2559_v44 }
 0x100   : > { %2097 = vmatmul.mubr.msk.f32.gmra.mrb[34].mxu1 %vm298_vm1, %v2557_v43 }
 0x189   : > { %v1997_v49 = vpop.f32.mrb[0].mxu1 }
 0x18a   : > { %v1991_v50 = vpop.f32.mrb[0].mxu0  ;;  %438 = vst.msk [vmem:[#allocation2 + $0x28] sm:$0xff] %vm432_vm2, %v1997_v49  ;;  %v413_v51 = vpop.f32.mrb[1].mxu1 }
 0x18b   : > { %434 = vst.msk [vmem:[#allocation2 + $0x8] sm:$0xff] %vm432_vm2, %v1991_v50  ;;  %v393_v52 = vpop.f32.mrb[1].mxu0  ;;  %437 = vst.msk [vmem:[#allocation2 + $0x20] sm:$0xff] %vm432_vm2, %v413_v51 }
 0x18c   : > { %433 = vst.msk [vmem:[#allocation2] sm:$0xff] %vm432_vm2, %v393_v52 }
 0x18f   : > { %v1994_v53 = vpop.f32.mrb[2].mxu0 }
 0x190   : > { %436 = vst.msk [vmem:[#allocation2 + $0x18] sm:$0xff] %vm432_vm2, %v1994_v53  ;;  %v403_v54 = vpop.f32.mrb[3].mxu0 }
 0x191   : > { %435 = vst.msk [vmem:[#allocation2 + $0x10] sm:$0xff] %vm432_vm2, %v403_v54  ;;  %v554_v16 = vld [vmem:[#allocation2 + $0x29] sm:$0x7f] }
 0x192   : > { %v550_v63 = vld [vmem:[#allocation2 + $0x9] sm:$0x7f]  ;;  %v553_v4 = vld [vmem:[#allocation2 + $0x21] sm:$0x7f] }
 0x193   : > { %v2000_v55 = vpop.f32.mrb[2].mxu1  ;;  %v2019_v56 = vpop.f32.mrb[4].mxu0  ;;  %v963_v28 = vld [vmem:[#allocation2 + $0x1] sm:$0x7f] }
 0x194   : > { %440 = vst.msk [vmem:[#allocation2 + $0x38] sm:$0xff] %vm432_vm2, %v2000_v55  ;;  %v423_v57 = vpop.f32.mrb[3].mxu1  ;;  %v643_v58 = vpop.f32.mrb[5].mxu0 }
 0x195   : > { %439 = vst.msk [vmem:[#allocation2 + $0x30] sm:$0xff] %vm432_vm2, %v423_v57 }
 0x197   : > { %v2005_v59 = vpop.f32.mrb[4].mxu1  ;;  %v2022_v60 = vpop.f32.mrb[6].mxu0  ;;  %v552_v8 = vld [vmem:[#allocation2 + $0x19] sm:$0x7f] }
 0x198   : > { %v551_v61 = vld [vmem:[#allocation2 + $0x11] sm:$0x7f]  ;;  %v511_v62 = vpop.f32.mrb[5].mxu1  ;;  %v653_v0 = vpop.f32.mrb[7].mxu0 }
 0x199   : > { %v558_v1 = vadd.f32 %v2005_v59, %v551_v61  ;;  %v557_v2 = vadd.f32 %v550_v63, %v511_v62 }
 0x19b   : > { %566 = vst.msk [vmem:[#allocation2 + $0x11] sm:$0x7f] %vm564_vm3, %v558_v1  ;;  %565 = vst.msk [vmem:[#allocation2 + $0x9] sm:$0x7f] %vm564_vm3, %v557_v2  ;;  %v2008_v3 = vpop.f32.mrb[6].mxu1  ;;  %v2025_v5 = vpop.f32.mrb[8].mxu0 }
 0x19c   : > { %v560_v6 = vadd.f32 %v2008_v3, %v553_v4  ;;  %v521_v7 = vpop.f32.mrb[7].mxu1  ;;  %v663_v9 = vpop.f32.mrb[9].mxu0  ;;  %v555_v12 = vld [vmem:[#allocation2 + $0x31] sm:$0x7f]  ;;  %v556_v26 = vld [vmem:[#allocation2 + $0x39] sm:$0x7f] }
 0x19d   : > { %v559_v10 = vadd.f32 %v552_v8, %v521_v7 }
 0x19e   : > { %568 = vst.msk [vmem:[#allocation2 + $0x21] sm:$0x7f] %vm564_vm3, %v560_v6 }
 0x19f   : > { %567 = vst.msk [vmem:[#allocation2 + $0x19] sm:$0x7f] %vm564_vm3, %v559_v10  ;;  %v2011_v11 = vpop.f32.mrb[8].mxu1  ;;  %v2028_v13 = vpop.f32.mrb[10].mxu0 }
 0x1a0   : > { %v562_v14 = vadd.f32 %v2011_v11, %v555_v12  ;;  %v531_v15 = vpop.f32.mrb[9].mxu1  ;;  %v673_v17 = vpop.f32.mrb[11].mxu0 }
 0x1a1   : > { %v561_v18 = vadd.f32 %v554_v16, %v531_v15 }
 0x1a2   : > { %v682_v19 = vld [vmem:[#allocation2 + $0x10] sm:$0xff]  ;;  %v681_v20 = vld [vmem:[#allocation2 + $0x8] sm:$0xff]  ;;  %570 = vst.msk [vmem:[#allocation2 + $0x31] sm:$0x7f] %vm564_vm3, %v562_v14 }
 0x1a3   : > { %v689_v21 = vadd.f32 %v2019_v56, %v682_v19  ;;  %v688_v22 = vadd.f32 %v681_v20, %v643_v58  ;;  %569 = vst.msk [vmem:[#allocation2 + $0x29] sm:$0x7f] %vm564_vm3, %v561_v18  ;;  %v2014_v23 = vpop.f32.mrb[10].mxu1  ;;  %v2729_v24 = vpop.f32.mrb[12].mxu0 }
 0x1a4   : > { %v541_v25 = vpop.f32.mrb[11].mxu1  ;;  %v924_v27 = vpop.f32.mrb[13].mxu0 }
 0x1a5   : > { %696 = vst.msk [vmem:[#allocation2 + $0x10] sm:$0xff] %vm432_vm2, %v689_v21  ;;  %695 = vst.msk [vmem:[#allocation2 + $0x8] sm:$0xff] %vm432_vm2, %v688_v22  ;;  %v684_v29 = vld [vmem:[#allocation2 + $0x20] sm:$0xff]  ;;  %v563_v30 = vadd.f32 %v556_v26, %v541_v25  ;;  %v971_v31 = vadd.f32 %v963_v28, %v924_v27 }
 0x1a6   : > { %v691_v32 = vadd.f32 %v2022_v60, %v684_v29  ;;  %v683_v33 = vld [vmem:[#allocation2 + $0x18] sm:$0xff] }
 0x1a7   : > { %v690_v34 = vadd.f32 %v683_v33, %v653_v0  ;;  %571 = vst.msk [vmem:[#allocation2 + $0x39] sm:$0x7f] %vm564_vm3, %v563_v30  ;;  %979 = vst.msk [vmem:[#allocation2 + $0x1] sm:$0x7f] %vm564_vm3, %v971_v31  ;;  %v2033_v35 = vpop.f32.mrb[12].mxu1  ;;  %v2735_v36 = vpop.f32.mrb[14].mxu0 }
 0x1a8   : > { %698 = vst.msk [vmem:[#allocation2 + $0x20] sm:$0xff] %vm432_vm2, %v691_v32  ;;  %v773_v37 = vpop.f32.mrb[13].mxu1  ;;  %v934_v38 = vpop.f32.mrb[15].mxu0  ;;  %v826_v43 = vrot.slane %v2033_v35, 1 }
 0x1a9   : > { %697 = vst.msk [vmem:[#allocation2 + $0x18] sm:$0xff] %vm432_vm2, %v690_v34  ;;  %v686_v39 = vld [vmem:[#allocation2 + $0x30] sm:$0xff]  ;;  %v825_v44 = vrot.slane %v773_v37, 1 }
 0x1aa   : > { %v693_v40 = vadd.f32 %v2025_v5, %v686_v39  ;;  %v685_v41 = vld [vmem:[#allocation2 + $0x28] sm:$0xff] }
 0x1ab   : > { %v692_v42 = vadd.f32 %v685_v41, %v663_v9  ;;  %v2036_v45 = vpop.f32.mrb[14].mxu1  ;;  %v2739_v46 = vpop.f32.mrb[16].mxu0 }
 0x1ac   : > { %700 = vst.msk [vmem:[#allocation2 + $0x30] sm:$0xff] %vm432_vm2, %v693_v40  ;;  %v812_v47 = vld [vmem:[#allocation2 + $0x10] sm:$0x7f]  ;;  %v811_v48 = vld [vmem:[#allocation2 + $0x8] sm:$0x7f]  ;;  %v783_v49 = vpop.f32.mrb[15].mxu1 }
 0x1ad   : > { %699 = vst.msk [vmem:[#allocation2 + $0x28] sm:$0xff] %vm432_vm2, %v692_v42  ;;  %v840_v50 = vadd.f32 %v826_v43, %v812_v47  ;;  %v839_v51 = vadd.f32 %v825_v44, %v811_v48  ;;  %v944_v52 = vpop.f32.mrb[17].mxu0  ;;  %v828_v54 = vrot.slane %v2036_v45, 1  ;;  %v827_v57 = vrot.slane %v783_v49, 1 }
 0x1ae   : > { %v687_v53 = vld [vmem:[#allocation2 + $0x38] sm:$0xff]  ;;  %v1097_v26 = vld [vmem:[#allocation2] sm:$0x7f] }
 0x1af   : > { %v694_v55 = vadd.f32 %v687_v53, %v673_v17  ;;  %847 = vst.msk [vmem:[#allocation2 + $0x10] sm:$0x7f] %vm564_vm3, %v840_v50  ;;  %846 = vst.msk [vmem:[#allocation2 + $0x8] sm:$0x7f] %vm564_vm3, %v839_v51  ;;  %v814_v56 = vld [vmem:[#allocation2 + $0x20] sm:$0x7f] }
 0x1b0   : > { %v2039_v58 = vpop.f32.mrb[16].mxu1  ;;  %v2745_v59 = vpop.f32.mrb[18].mxu0  ;;  %v842_v60 = vadd.f32 %v828_v54, %v814_v56  ;;  %v813_v61 = vld [vmem:[#allocation2 + $0x18] sm:$0x7f] }
 0x1b1   : > { %v793_v62 = vpop.f32.mrb[17].mxu1  ;;  %v954_v63 = vpop.f32.mrb[19].mxu0  ;;  %701 = vst.msk [vmem:[#allocation2 + $0x38] sm:$0xff] %vm432_vm2, %v694_v55  ;;  %v841_v0 = vadd.f32 %v827_v57, %v813_v61  ;;  %v830_v1 = vrot.slane %v2039_v58, 1 }
 0x1b2   : > { %849 = vst.msk [vmem:[#allocation2 + $0x20] sm:$0x7f] %vm564_vm3, %v842_v60  ;;  %v829_v3 = vrot.slane %v793_v62, 1 }
 0x1b3   : > { %848 = vst.msk [vmem:[#allocation2 + $0x18] sm:$0x7f] %vm564_vm3, %v841_v0  ;;  %v816_v2 = vld [vmem:[#allocation2 + $0x30] sm:$0x7f]  ;;  %v2042_v4 = vpop.f32.mrb[18].mxu1  ;;  %v2750_v5 = vpop.f32.mrb[20].mxu0 }
 0x1b4   : > { %v844_v6 = vadd.f32 %v830_v1, %v816_v2  ;;  %v815_v7 = vld [vmem:[#allocation2 + $0x28] sm:$0x7f]  ;;  %v803_v8 = vpop.f32.mrb[19].mxu1  ;;  %v1216_v9 = vpop.f32.mrb[21].mxu0 }
 0x1b5   : > { %v843_v10 = vadd.f32 %v829_v3, %v815_v7  ;;  %v831_v15 = vrot.slane %v803_v8, 1 }
 0x1b6   : > { %v964_v11 = vld [vmem:[#allocation2 + $0x9] sm:$0x7f]  ;;  %v965_v12 = vld [vmem:[#allocation2 + $0x11] sm:$0x7f]  ;;  %851 = vst.msk [vmem:[#allocation2 + $0x30] sm:$0x7f] %vm564_vm3, %v844_v6 }
 0x1b7   : > { %v972_v13 = vadd.f32 %v2729_v24, %v964_v11  ;;  %v973_v14 = vadd.f32 %v965_v12, %v934_v38  ;;  %850 = vst.msk [vmem:[#allocation2 + $0x28] sm:$0x7f] %vm564_vm3, %v843_v10  ;;  %v2061_v16 = vpop.f32.mrb[20].mxu1  ;;  %v2755_v17 = vpop.f32.mrb[22].mxu0 }
 0x1b8   : > { %v817_v18 = vld [vmem:[#allocation2 + $0x38] sm:$0x7f]  ;;  %v1058_v19 = vpop.f32.mrb[21].mxu1  ;;  %v2757_v20 = vpop.f32.mrb[23].mxu0  ;;  %v1114_v37 = vrot.slane %v2061_v16, 1 }
 0x1b9   : > { %980 = vst.msk [vmem:[#allocation2 + $0x9] sm:$0x7f] %vm564_vm3, %v972_v13  ;;  %981 = vst.msk [vmem:[#allocation2 + $0x11] sm:$0x7f] %vm564_vm3, %v973_v14  ;;  %v967_v21 = vld [vmem:[#allocation2 + $0x21] sm:$0x7f]  ;;  %v845_v22 = vadd.f32 %v831_v15, %v817_v18 }
 0x1ba   : > { %v1113_v23 = vrot.slane %v1058_v19, 1  ;;  %v966_v25 = vld [vmem:[#allocation2 + $0x19] sm:$0x7f]  ;;  %v975_v24 = vadd.f32 %v967_v21, %v944_v52 }
 0x1bb   : > { %v974_v27 = vadd.f32 %v2735_v36, %v966_v25  ;;  %852 = vst.msk [vmem:[#allocation2 + $0x38] sm:$0x7f] %vm564_vm3, %v845_v22  ;;  %v2064_v29 = vpop.f32.mrb[22].mxu1  ;;  %v2763_v30 = vpop.f32.mrb[24].mxu0 }
 0x1bc   : > { %v1129_v28 = vadd.f32 %v1113_v23, %v1097_v26  ;;  %983 = vst.msk [vmem:[#allocation2 + $0x21] sm:$0x7f] %vm564_vm3, %v975_v24  ;;  %v1068_v31 = vpop.f32.mrb[23].mxu1  ;;  %v2766_v32 = vpop.f32.mrb[25].mxu0  ;;  %v1116_v50 = vrot.slane %v2064_v29, 1 }
 0x1bd   : > { %982 = vst.msk [vmem:[#allocation2 + $0x19] sm:$0x7f] %vm564_vm3, %v974_v27  ;;  %v969_v33 = vld [vmem:[#allocation2 + $0x31] sm:$0x7f]  ;;  %v1115_v38 = vrot.slane %v1068_v31, 1 }
 0x1be   : > { %1137 = vst.msk [vmem:[#allocation2] sm:$0x7f] %vm564_vm3, %v1129_v28  ;;  %v968_v34 = vld [vmem:[#allocation2 + $0x29] sm:$0x7f]  ;;  %v977_v35 = vadd.f32 %v969_v33, %v954_v63 }
 0x1bf   : > { %v976_v36 = vadd.f32 %v2739_v46, %v968_v34  ;;  %v2067_v39 = vpop.f32.mrb[24].mxu1  ;;  %v2771_v40 = vpop.f32.mrb[26].mxu0 }
 0x1c0   : > { %985 = vst.msk [vmem:[#allocation2 + $0x31] sm:$0x7f] %vm564_vm3, %v977_v35  ;;  %v1098_v41 = vld [vmem:[#allocation2 + $0x8] sm:$0x7f]  ;;  %v1099_v42 = vld [vmem:[#allocation2 + $0x10] sm:$0x7f] }
 0x1c1   : > { %v1078_v43 = vpop.f32.mrb[25].mxu1  ;;  %984 = vst.msk [vmem:[#allocation2 + $0x29] sm:$0x7f] %vm564_vm3, %v976_v36  ;;  %v1130_v44 = vadd.f32 %v1114_v37, %v1098_v41  ;;  %v1131_v45 = vadd.f32 %v1115_v38, %v1099_v42  ;;  %v2775_v48 = vpop.f32.mrb[27].mxu0  ;;  %v1118_v62 = vrot.slane %v2067_v39, 1 }
 0x1c2   : > { %v1117_v47 = vrot.slane %v1078_v43, 1  ;;  %v970_v49 = vld [vmem:[#allocation2 + $0x39] sm:$0x7f] }
 0x1c3   : > { %v978_v46 = vadd.f32 %v2745_v59, %v970_v49  ;;  %1138 = vst.msk [vmem:[#allocation2 + $0x8] sm:$0x7f] %vm564_vm3, %v1130_v44  ;;  %1139 = vst.msk [vmem:[#allocation2 + $0x10] sm:$0x7f] %vm564_vm3, %v1131_v45  ;;  %v1101_v51 = vld [vmem:[#allocation2 + $0x20] sm:$0x7f] }
 0x1c4   : > { %v2070_v52 = vpop.f32.mrb[26].mxu1  ;;  %v2780_v53 = vpop.f32.mrb[28].mxu0  ;;  %v1100_v55 = vld [vmem:[#allocation2 + $0x18] sm:$0x7f]  ;;  %v1133_v56 = vadd.f32 %v1117_v47, %v1101_v51 }
 0x1c5   : > { %v1254_v54 = vld [vmem:[#allocation2 + $0x1] sm:$0x7f]  ;;  %986 = vst.msk [vmem:[#allocation2 + $0x39] sm:$0x7f] %vm564_vm3, %v978_v46  ;;  %v1132_v58 = vadd.f32 %v1116_v50, %v1100_v55  ;;  %v1088_v60 = vpop.f32.mrb[27].mxu1  ;;  %v1476_v61 = vpop.f32.mrb[29].mxu0 }
 0x1c6   : > { %v1261_v57 = vadd.f32 %v2750_v5, %v1254_v54  ;;  %1141 = vst.msk [vmem:[#allocation2 + $0x20] sm:$0x7f] %vm564_vm3, %v1133_v56  ;;  %v1119_v59 = vrot.slane %v1088_v60, 1  ;;  %v1120_v11 = vrot.slane %v2070_v52, 1  ;;  %v1528_v39 = vrot.slane %v2780_v53, 1 }
 0x1c7   : > { %1140 = vst.msk [vmem:[#allocation2 + $0x18] sm:$0x7f] %vm564_vm3, %v1132_v58  ;;  %v1103_v63 = vld [vmem:[#allocation2 + $0x30] sm:$0x7f]  ;;  %v2089_v0 = vpop.f32.mrb[28].mxu1  ;;  %v2787_v1 = vpop.f32.mrb[30].mxu0 }
 0x1c8   : > { %1268 = vst.msk [vmem:[#allocation2 + $0x1] sm:$0x7f] %vm564_vm3, %v1261_v57  ;;  %v1102_v2 = vld [vmem:[#allocation2 + $0x28] sm:$0x7f]  ;;  %v1135_v3 = vadd.f32 %v1119_v59, %v1103_v63  ;;  %v1346_v4 = vpop.f32.mrb[29].mxu1  ;;  %v2789_v6 = vpop.f32.mrb[31].mxu0 }
 0x1c9   : > { %v1134_v5 = vadd.f32 %v1118_v62, %v1102_v2  ;;  %v1530_v46 = vrot.slane %v2787_v1, 1  ;;  %v1529_v50 = vrot.slane %v2789_v6, 1 }
 0x1ca   : > { %v1255_v7 = vld [vmem:[#allocation2 + $0x9] sm:$0x7f]  ;;  %v1256_v8 = vld [vmem:[#allocation2 + $0x11] sm:$0x7f]  ;;  %1143 = vst.msk [vmem:[#allocation2 + $0x30] sm:$0x7f] %vm564_vm3, %v1135_v3 }
 0x1cb   : > { %v1262_v9 = vadd.f32 %v1255_v7, %v2757_v20  ;;  %v1263_v10 = vadd.f32 %v2755_v17, %v1256_v8  ;;  %1142 = vst.msk [vmem:[#allocation2 + $0x28] sm:$0x7f] %vm564_vm3, %v1134_v5  ;;  %v2092_v12 = vpop.f32.mrb[30].mxu1  ;;  %v2795_v13 = vpop.f32.mrb[32].mxu0 }
 0x1cc   : > { %v1104_v14 = vld [vmem:[#allocation2 + $0x38] sm:$0x7f]  ;;  %v1355_v15 = vpop.f32.mrb[31].mxu1  ;;  %v2797_v16 = vpop.f32.mrb[33].mxu0  ;;  %v1532_v56 = vrot.slane %v2795_v13, 1 }
 0x1cd   : > { %1269 = vst.msk [vmem:[#allocation2 + $0x9] sm:$0x7f] %vm564_vm3, %v1262_v9  ;;  %1270 = vst.msk [vmem:[#allocation2 + $0x11] sm:$0x7f] %vm564_vm3, %v1263_v10  ;;  %v1258_v18 = vld [vmem:[#allocation2 + $0x21] sm:$0x7f]  ;;  %v1136_v19 = vadd.f32 %v1120_v11, %v1104_v14 }
 0x1ce   : > { %v1257_v20 = vld [vmem:[#allocation2 + $0x19] sm:$0x7f]  ;;  %v1265_v17 = vadd.f32 %v2763_v30, %v1258_v18  ;;  %v1531_v57 = vrot.slane %v2797_v16, 1 }
 0x1cf   : > { %v1384_v21 = vld [vmem:[#allocation2] sm:$0xff]  ;;  %v1264_v22 = vadd.f32 %v1257_v20, %v2766_v32  ;;  %1144 = vst.msk [vmem:[#allocation2 + $0x38] sm:$0x7f] %vm564_vm3, %v1136_v19  ;;  %v2095_v25 = vpop.f32.mrb[32].mxu1  ;;  %v2112_v24 = vpop.f32.mrb[34].mxu0 }
 0x1d0   : > { %v1391_v23 = vadd.f32 %v2089_v0, %v1384_v21  ;;  %1272 = vst.msk [vmem:[#allocation2 + $0x21] sm:$0x7f] %vm564_vm3, %v1265_v17  ;;  %v1365_v26 = vpop.f32.mrb[33].mxu1  ;;  %v1505_v27 = vpop.f32.mrb[35].mxu0  ;;  %v1534_v63 = vrot.slane %v2112_v24, 1 }
 0x1d1   : > { %1271 = vst.msk [vmem:[#allocation2 + $0x19] sm:$0x7f] %vm564_vm3, %v1264_v22  ;;  %v1260_v28 = vld [vmem:[#allocation2 + $0x31] sm:$0x7f]  ;;  %v1533_v0 = vrot.slane %v1505_v27, 1 }
 0x1d2   : > { %1398 = vst.msk [vmem:[#allocation2] sm:$0xff] %vm432_vm2, %v1391_v23  ;;  %v1259_v29 = vld [vmem:[#allocation2 + $0x29] sm:$0x7f]  ;;  %v1267_v30 = vadd.f32 %v2771_v40, %v1260_v28 }
 0x1d3   : > { %v1266_v31 = vadd.f32 %v1259_v29, %v2775_v48  ;;  %v2098_v32 = vpop.f32.mrb[34].mxu1 }
 0x1d4   : > { %1274 = vst.msk [vmem:[#allocation2 + $0x31] sm:$0x7f] %vm564_vm3, %v1267_v30  ;;  %v1386_v33 = vld [vmem:[#allocation2 + $0x10] sm:$0xff]  ;;  %v1385_v34 = vld [vmem:[#allocation2 + $0x8] sm:$0xff]  ;;  %v1375_v35 = vpop.f32.mrb[35].mxu1 }
 0x1d5   : > { %1273 = vst.msk [vmem:[#allocation2 + $0x29] sm:$0x7f] %vm564_vm3, %v1266_v31  ;;  %v1393_v36 = vadd.f32 %v2092_v12, %v1386_v33  ;;  %v1392_v37 = vadd.f32 %v1385_v34, %v1355_v15 }
 0x1d6   : > { %v2812_v38 = vld [vmem:[#allocation2 + $0x38] sm:$0xff] }
 0x1d7   : > { %1400 = vst.msk [vmem:[#allocation2 + $0x10] sm:$0xff] %vm432_vm2, %v1393_v36  ;;  %1399 = vst.msk [vmem:[#allocation2 + $0x8] sm:$0xff] %vm432_vm2, %v1392_v37  ;;  %v1388_v40 = vld [vmem:[#allocation2 + $0x20] sm:$0xff] }
 0x1d8   : > { %1624 = vst.msk [vmem:[%s2817_s30 + $0x38] sm:$0xff] %vm432_vm2, %v2812_v38  ;;  %v1395_v42 = vadd.f32 %v2095_v25, %v1388_v40  ;;  %v1387_v43 = vld [vmem:[#allocation2 + $0x18] sm:$0xff] }
 0x1d9   : > { %v1514_v41 = vld [vmem:[#allocation2] sm:$0x7f]  ;;  %v1394_v45 = vadd.f32 %v1387_v43, %v1365_v26 }
 0x1da   : > { %v1542_v44 = vadd.f32 %v1528_v39, %v1514_v41  ;;  %1402 = vst.msk [vmem:[#allocation2 + $0x20] sm:$0xff] %vm432_vm2, %v1395_v42 }
 0x1db   : > { %1401 = vst.msk [vmem:[#allocation2 + $0x18] sm:$0xff] %vm432_vm2, %v1394_v45  ;;  %v1390_v47 = vld [vmem:[#allocation2 + $0x30] sm:$0xff] }
 0x1dc   : > { %1549 = vst.msk [vmem:[#allocation2] sm:$0x7f] %vm564_vm3, %v1542_v44  ;;  %v1397_v48 = vadd.f32 %v2098_v32, %v1390_v47  ;;  %v1389_v49 = vld [vmem:[#allocation2 + $0x28] sm:$0xff] }
 0x1dd   : > { %v1396_v51 = vadd.f32 %v1389_v49, %v1375_v35 }
 0x1de   : > { %v1516_v52 = vld [vmem:[#allocation2 + $0x10] sm:$0x7f]  ;;  %v1515_v53 = vld [vmem:[#allocation2 + $0x8] sm:$0x7f]  ;;  %1404 = vst.msk [vmem:[#allocation2 + $0x30] sm:$0xff] %vm432_vm2, %v1397_v48 }
 0x1df   : > { %v1544_v54 = vadd.f32 %v1530_v46, %v1516_v52  ;;  %v1543_v55 = vadd.f32 %v1529_v50, %v1515_v53  ;;  %1403 = vst.msk [vmem:[#allocation2 + $0x28] sm:$0xff] %vm432_vm2, %v1396_v51 }
 0x1e1   : > { %1551 = vst.msk [vmem:[#allocation2 + $0x10] sm:$0x7f] %vm564_vm3, %v1544_v54  ;;  %1550 = vst.msk [vmem:[#allocation2 + $0x8] sm:$0x7f] %vm564_vm3, %v1543_v55  ;;  %v1518_v58 = vld [vmem:[#allocation2 + $0x20] sm:$0x7f] }
 0x1e2   : > { %v1546_v60 = vadd.f32 %v1532_v56, %v1518_v58  ;;  %v1517_v61 = vld [vmem:[#allocation2 + $0x18] sm:$0x7f] }
 0x1e3   : > { %v1556_v59 = vld [vmem:[#allocation2] sm:$0xff]  ;;  %v1545_v62 = vadd.f32 %v1531_v57, %v1517_v61 }
 0x1e4   : > { %1617 = vst.msk [vmem:[%s2817_s30] sm:$0xff] %vm432_vm2, %v1556_v59  ;;  %v1587_v6 = vmul.f32 %v1556_v59, %v1556_v59  ;;  %v1564_v8 = vsel %vm432_vm2, %v1556_v59, 0.0 }
 0x1e5   : > { %1553 = vst.msk [vmem:[#allocation2 + $0x20] sm:$0x7f] %vm564_vm3, %v1546_v60  ;;  %1552 = vst.msk [vmem:[#allocation2 + $0x18] sm:$0x7f] %vm564_vm3, %v1545_v62  ;;  %v1520_v1 = vld [vmem:[#allocation2 + $0x30] sm:$0x7f] }
 0x1e6   : > { %v1548_v2 = vadd.f32 %v1534_v63, %v1520_v1  ;;  %v1519_v3 = vld [vmem:[#allocation2 + $0x28] sm:$0x7f]  ;;  %v1595_v15 = vsel %vm432_vm2, %v1587_v6, 0.0 }
 0x1e7   : > { %v1547_v4 = vadd.f32 %v1533_v0, %v1519_v3 }
 0x1e8   : > { %1555 = vst.msk [vmem:[#allocation2 + $0x30] sm:$0x7f] %vm564_vm3, %v1548_v2  ;;  %v1557_v5 = vld [vmem:[#allocation2 + $0x8] sm:$0xff]  ;;  %v1558_v7 = vld [vmem:[#allocation2 + $0x10] sm:$0xff] }
 0x1e9   : > { %1554 = vst.msk [vmem:[#allocation2 + $0x28] sm:$0x7f] %vm564_vm3, %v1547_v4  ;;  %v1565_v9 = vsel %vm432_vm2, %v1557_v5, 0.0  ;;  %v1588_v10 = vmul.f32 %v1557_v5, %v1557_v5  ;;  %v1589_v11 = vmul.f32 %v1558_v7, %v1558_v7  ;;  %v1567_v14 = vsel %vm432_vm2, %v1558_v7, 0.0 }
 0x1ea   : > { %1618 = vst.msk [vmem:[%s2817_s30 + $0x8] sm:$0xff] %vm432_vm2, %v1557_v5  ;;  %1619 = vst.msk [vmem:[%s2817_s30 + $0x10] sm:$0xff] %vm432_vm2, %v1558_v7  ;;  %v1566_v12 = vadd.f32 %v1565_v9, %v1564_v8 }
 0x1eb   : > { %v1596_v16 = vsel %vm432_vm2, %v1588_v10, 0.0  ;;  %v1598_v23 = vsel %vm432_vm2, %v1589_v11, 0.0 }
 0x1ec   : > { %v1560_v13 = vld [vmem:[#allocation2 + $0x20] sm:$0xff]  ;;  %v1559_v18 = vld [vmem:[#allocation2 + $0x18] sm:$0xff]  ;;  %v1568_v19 = vadd.f32 %v1567_v14, %v1566_v12  ;;  %v1597_v20 = vadd.f32 %v1596_v16, %v1595_v15 }
 0x1ed   : > { %1621 = vst.msk [vmem:[%s2817_s30 + $0x20] sm:$0xff] %vm432_vm2, %v1560_v13  ;;  %v1569_v17 = vsel %vm432_vm2, %v1559_v18, 0.0  ;;  %v1590_v21 = vmul.f32 %v1559_v18, %v1559_v18  ;;  %v1591_v22 = vmul.f32 %v1560_v13, %v1560_v13  ;;  %1620 = vst.msk [vmem:[%s2817_s30 + $0x18] sm:$0xff] %vm432_vm2, %v1559_v18  ;;  %v1571_v27 = vsel %vm432_vm2, %v1560_v13, 0.0 }
 0x1ee   : > { %v1570_v25 = vadd.f32 %v1569_v17, %v1568_v19  ;;  %v1599_v24 = vadd.f32 %v1598_v23, %v1597_v20 }
 0x1ef   : > { %v1562_v26 = vld [vmem:[#allocation2 + $0x30] sm:$0xff]  ;;  %v1600_v28 = vsel %vm432_vm2, %v1590_v21, 0.0  ;;  %v1602_v35 = vsel %vm432_vm2, %v1591_v22, 0.0 }
 0x1f0   : > { %v1561_v29 = vld [vmem:[#allocation2 + $0x28] sm:$0xff]  ;;  %v1572_v30 = vadd.f32 %v1571_v27, %v1570_v25  ;;  %1623 = vst.msk [vmem:[%s2817_s30 + $0x30] sm:$0xff] %vm432_vm2, %v1562_v26  ;;  %v1601_v31 = vadd.f32 %v1600_v28, %v1599_v24  ;;  %v1593_v34 = vmul.f32 %v1562_v26, %v1562_v26 }
 0x1f1   : > { %v1573_v32 = vsel %vm432_vm2, %v1561_v29, 0.0  ;;  %v1592_v33 = vmul.f32 %v1561_v29, %v1561_v29  ;;  %1622 = vst.msk [vmem:[%s2817_s30 + $0x28] sm:$0xff] %vm432_vm2, %v1561_v29 }
 0x1f2   : > { %v1574_v36 = vadd.f32 %v1573_v32, %v1572_v30 }
 0x1f3   : > { %2219 = shalt.err (!%p2216_p2)
}
 0x1f4   : > { %s2220_s8 = scalar_lea.hbm %s2859_s9, 1024  ;;  %s2224_s12 = scalar_lea.hbm %s2995_s2, 2048 }
 0x1f5   : > { %p2221_p4 = scmp.ne.s32.totalorder %s2859_s9, %s2220_s8  ;;  %p2225_p9 = scmp.lt.u32.totalorder %s2859_s9, %s2995_s2 }
 0x1f6   : > { %p2226_p1 = scmp.lt.u32.totalorder %s2224_s12, %s2220_s8  ;;  %p2228_p6 = scmp.lt.u32.totalorder %s2220_s8, %s2859_s9 }
 0x1f7   : > { %p2222_p5 = pnand %p2221_p4, %p3004_p11 }
 0x1f8   : > { %p2227_p3 = por %p2226_p1, %p2225_p9 }
 0x1f9   : > { %p2223_p7 = pneg %p2222_p5 }
 0x1fa   : > { %p2229_p12 = por %p2228_p6, %p2227_p3 }
 0x1fc   : > { %p2230_p13 = pnand %p2229_p12, %p2223_p7 }
 0x1fe   : > { %2233 = shalt.err (!%p2230_p13)
}
 0x1ff   : > { %s2339_s6 = smov 128   ;;  %s2340_s7 = smov 8   ;;  %v1603_v37 = vadd.f32 %v1602_v35, %v1601_v31  ;;  %v1575_v39 = vsel %vm432_vm2, %v1562_v26, 0.0  ;;  %v1594_v40 = vmul.f32 %v2812_v38, %v2812_v38  ;;  %v1604_v41 = vsel %vm432_vm2, %v1592_v33, 0.0 }
 0x200   : > { %2117 = dma.vmem_to_hbm [thread:$0]  (%p3004_p11), %s2861_s5, 1024, %s2859_s9, %s1626_s13, %s2339_s6, %s2339_s6, %s2340_s7   ;;  %v1576_v42 = vadd.f32 %v1575_v39, %v1574_v36  ;;  %v1577_v44 = vsel %vm432_vm2, %v2812_v38, 0.0  ;;  %v1606_v45 = vsel %vm432_vm2, %v1593_v34, 0.0  ;;  %vm1585_vm4 = vcmask 57344  }
 0x201   : > { %v1605_v43 = vadd.f32 %v1604_v41, %v1603_v37  ;;  %v1608_v49 = vsel %vm432_vm2, %v1594_v40, 0.0  ;;  %s1630_s5 = sand.u32 1, %s2389_s19   ;;  %s1900_s9 = sshll.u32 %s2389_s19, 4 }
 0x202   : > { %v1578_v47 = vadd.f32 %v1577_v44, %v1576_v42  ;;  %s225_s13 = scalar_lea.vmem [#allocation7], %s2474_s14  ;;  %s231_s23 = scalar_lea.vmem [#allocation9], %s2474_s14 }
 0x203   : > { %v1607_v48 = vadd.f32 %v1606_v45, %v1605_v43  ;;  %s1663_s22 = sshll.u32 %s225_s13, 4  ;;  %s1676_s25 = sshll.u32 %s231_s23, 4  ;;  %s2914_s22 = int_to_ptr.vmem [resolvable:$true] %s1663_s22  ;;  %s2922_s25 = int_to_ptr.vmem [resolvable:$true] %s1676_s25 }
 0x204   : > { %v1579_v46 = vrot.slane %v1578_v47, 4  ;;  %s2912_s10 = scalar_lea.hbm %s2996_s3, %s1900_s9  ;;  %s2920_s12 = scalar_lea.hbm %s2997_s4, %s1900_s9 }
 0x205   : > { %v1609_v50 = vadd.f32 %v1608_v49, %v1607_v48  ;;  %s2924_s30 = scalar_lea.sflag [#allocation8], %s1630_s5  ;;  %s2234_s29 = scalar_lea.vmem %s2914_s22, 16 }
 0x206   : > { %v1580_v51 = vadd.f32 %v1579_v46, %v1578_v47  ;;  %p2235_p8 = scmp.ne.s32.totalorder %s2914_s22, %s2234_s29  ;;  %s2341_s6 = smov [#allocation7]  }
 0x207   : > { %v1610_v52 = vrot.slane %v1609_v50, 4  ;;  %s2238_s7 = sshll.u32 %s2341_s6, 4  ;;  %s2239_s7 = int_to_ptr.vmem [resolvable:$false] %s2238_s7 }
 0x208   : > { %v1581_v53 = vrot.slane %v1580_v51, 2  ;;  %p2236_p10 = pnand %p2235_p8, %p3004_p11  ;;  %s2240_s26 = scalar_lea.vmem %s2239_s7, 32 }
 0x209   : > { %v1611_v54 = vadd.f32 %v1610_v52, %v1609_v50  ;;  %p2241_p2 = scmp.lt.s32.totalorder %s2914_s22, %s2239_s7  ;;  %p2242_p4 = scmp.lt.s32.totalorder %s2240_s26, %s2234_s29 }
 0x20a   : > { %v1582_v55 = vadd.f32 %v1581_v53, %v1580_v51  ;;  %p2237_p0 = pneg %p2236_p10 }
 0x20b   : > { %v1612_v56 = vrot.slane %v1611_v54, 2  ;;  %p2243_p5 = por %p2242_p4, %p2241_p2 }
 0x20c   : > { %v1583_v38 = vrot.slane %v1582_v55, 1 }
 0x20d   : > { %v1613_v57 = vadd.f32 %v1612_v56, %v1611_v54  ;;  %p2244_p7 = pnand %p2243_p5, %p2237_p0 }
 0x20e   : > { %v1584_v58 = vadd.f32 %v1583_v38, %v1582_v55 }
 0x20f   : > { %v1614_v60 = vrot.slane %v1613_v57, 1 }
 0x210   : > { %1586 = vst.msk [vmem:[%s225_s13] sm:$0x1] %vm1585_vm4, %v1584_v58 }
 0x211   : > { %v1615_v61 = vadd.f32 %v1614_v60, %v1613_v57 }
 0x212   : > { %2247 = shalt.err (!%p2244_p7)
}
 0x213   : > { %s2248_s5 = scalar_lea.hbm %s2912_s10, 16  ;;  %s2252_s8 = scalar_lea.hbm %s2996_s3, 32 }
 0x214   : > { %p2249_p9 = scmp.ne.s32.totalorder %s2912_s10, %s2248_s5  ;;  %p2253_p6 = scmp.lt.u32.totalorder %s2912_s10, %s2996_s3 }
 0x215   : > { %p2254_p12 = scmp.lt.u32.totalorder %s2252_s8, %s2248_s5  ;;  %p2256_p8 = scmp.lt.u32.totalorder %s2248_s5, %s2912_s10 }
 0x216   : > { %p2250_p1 = pnand %p2249_p9, %p3004_p11 }
 0x217   : > { %p2255_p13 = por %p2254_p12, %p2253_p6 }
 0x218   : > { %p2251_p3 = pneg %p2250_p1 }
 0x219   : > { %p2257_p10 = por %p2256_p8, %p2255_p13 }
 0x21b   : > { %p2258_p0 = pnand %p2257_p10, %p2251_p3 }
 0x21d   : > { %2261 = shalt.err (!%p2258_p0)
}
 0x21e   : > { %2118 = dma.vmem_to_hbm [thread:$0]  (%p3004_p11), %s2914_s22, 16, %s2912_s10, %s2924_s30   ;;  %1616 = vst.msk [vmem:[%s231_s23] sm:$0x1] %vm1585_vm4, %v1615_v61 }
 0x21f   : > { %s2262_s29 = scalar_lea.vmem %s2922_s25, 16  ;;  %s2342_s6 = smov [#allocation9]  }
 0x220   : > { %p2263_p2 = scmp.ne.s32.totalorder %s2922_s25, %s2262_s29  ;;  %s2266_s7 = sshll.u32 %s2342_s6, 4  ;;  %s2267_s7 = int_to_ptr.vmem [resolvable:$false] %s2266_s7 }
 0x221   : > { %s2268_s26 = scalar_lea.vmem %s2267_s7, 32  ;;  %p2269_p7 = scmp.lt.s32.totalorder %s2922_s25, %s2267_s7 }
 0x222   : > { %p2264_p4 = pnand %p2263_p2, %p3004_p11  ;;  %p2270_p9 = scmp.lt.s32.totalorder %s2268_s26, %s2262_s29 }
 0x224   : > { %p2265_p5 = pneg %p2264_p4  ;;  %p2271_p1 = por %p2270_p9, %p2269_p7 }
 0x226   : > { %p2272_p3 = pnand %p2271_p1, %p2265_p5 }
 0x228   : > { %2275 = shalt.err (!%p2272_p3)
}
 0x229   : > { %s2276_s14 = scalar_lea.hbm %s2920_s12, 16  ;;  %s2280_s10 = scalar_lea.hbm %s2997_s4, 32 }
 0x22a   : > { %p2277_p6 = scmp.ne.s32.totalorder %s2920_s12, %s2276_s14  ;;  %p2281_p8 = scmp.lt.u32.totalorder %s2920_s12, %s2997_s4 }
 0x22b   : > { %p2282_p10 = scmp.lt.u32.totalorder %s2280_s10, %s2276_s14  ;;  %p2284_p2 = scmp.lt.u32.totalorder %s2276_s14, %s2920_s12 }
 0x22c   : > { %p2278_p12 = pnand %p2277_p6, %p3004_p11 }
 0x22d   : > { %p2283_p0 = por %p2282_p10, %p2281_p8 }
 0x22e   : > { %p2279_p13 = pneg %p2278_p12 }
 0x22f   : > { %p2285_p4 = por %p2284_p2, %p2283_p0 }
 0x231   : > { %p2286_p5 = pnand %p2285_p4, %p2279_p13 }
 0x233   : > { %2289 = shalt.err (!%p2286_p5)
}
 0x234   : > { %2119 = dma.vmem_to_hbm [thread:$0]  (%p3004_p11), %s2922_s25, 16, %s2920_s12, %s2924_s30  }
 0x235 PF: > { %s1688_s13 = sand.u32 1, %s2320_s15   ;;  %p3005_p7 = scmp.ne.s32.totalorder %s3002_s28, 0 }
 0x236   : > { %p3006_p9 = scmp.ge.s32.totalorder %s2332_s18, 2  ;;  %s1689_s8 = scalar_lea.sflag [#allocation5], %s1688_s13 }
 0x238   : > { %p2128_p1 = pnand %p3006_p9, %p3005_p7 }
 0x23a   : > { %2311 = dma.done.wait (!%p2128_p1), %s1689_s8, 1024  }
 0x23b   : > { %2313 = vsyncadd (!%p2128_p1), %s1689_s8, 4294966272  ;;  %s1697_s19 = sand.u32 1, %s1799_s20  }
 0x23c   : > { %s1698_s11 = scalar_lea.sflag [#allocation8], %s1697_s19 }
 0x23d   : > { %2315 = dma.done.wait (!%p2128_p1), %s1698_s11, 32  }
 0x23e   : > { %2317 = vsyncadd (!%p2128_p1), %s1698_s11, 4294967264  ;;  %p21_p11 = scmp.ge.s32.totalorder %s2393_s21, 4   ;;  %s3007_s15 = smov %s2324_s16 }
 0x23f   : > { %s3008_s16 = smov %s2328_s17  ;;  %s3009_s17 = smov %s2405_s24 }
 0x240   : > { %s3010_s18 = smov %s2393_s21  ;;  %23 = sbr.rel (!%p21_p11) target bundleno = 7 (0x7), region = 114 }
 0x247   :  { %1710 = vsyncpa [#allocation4], 1 }
 0x248   :  { %1712 = vsyncpa [#allocation4 + $0x1], 1 }
 0x249   :  { %1713 = vsyncpa [#allocation5], 1 }
 0x24a   :  { %1715 = vsyncpa [#allocation5 + $0x1], 1 }
 0x24b   :  { %1716 = vsyncpa [#allocation8], 1 }
 0x24c   :  { %1718 = vsyncpa [#allocation8 + $0x1], 1 }

</bundles_post_ra>
